<compile_context>
chip_gen: v5e
topology: v5e:2x2
jax: 0.10.0
libtpu: 0.0.40
codegen_flags: <defaults>
</compile_context>

<pallas_src>
import functools

import jax
import jax.numpy as jnp
from jax.experimental import pallas as pl
from jax.experimental.pallas import tpu as pltpu

D_IN = 784            # fc1 input (28*28); unpadded, Mosaic handles K=784 internally
D_HID = 400           # fc1 output
D_HID_P = 512         # lane-padded hidden width (400 -> 512); padded cols are exact 0
D_LAT = 20            # latent dim
D_LAT_P = 128         # lane-aligned latent slab (one full lane group)
D_HEADS_P = 2 * D_LAT_P  # fused [mu | logvar] head: mu in [0:20], logvar in [128:148]


def _round_up(n, m):
    return ((n + m - 1) // m) * m


def encoder_kernel(x_ref, w1_ref, b1_ref, wh_ref, bh_ref, eps_ref,
                   z_ref, kld_ref, *, tb, batch):
    i = pl.program_id(0)

    # h1 = relu(x @ W1 + b1); bf16 MXU operands, f32 accumulation, f32 epilogue.
    x = x_ref[...].astype(jnp.bfloat16)                                  # (TB, 784)
    h1 = jnp.dot(x, w1_ref[...], preferred_element_type=jnp.float32)     # (TB, 512)
    h1 = jnp.maximum(h1 + b1_ref[...], 0.0)

    # Fused lane-aligned heads: y = h1 @ [W21 | 0 | W22 | 0] + [b21 | 0 | b22 | 0]
    y = jnp.dot(h1.astype(jnp.bfloat16), wh_ref[...],
                preferred_element_type=jnp.float32) + bh_ref[...]        # (TB, 256)
    mu = y[:, :D_LAT_P]       # lane-group aligned; cols 20:128 are exactly 0
    logvar = y[:, D_LAT_P:]   # lane-group aligned; cols 20:128 are exactly 0

    # reparametrize: z = eps * exp(0.5 * logvar) + mu
    std = jnp.exp(0.5 * logvar)
    z_ref[...] = eps_ref[...] * std + mu       # full 128-lane unmasked store

    # Per-tile KLD partial: -0.5 * sum(1 + logvar - mu^2 - exp(logvar)),
    # with exp(logvar) = std*std.  Padded head columns give 1 + 0 - 0 - 1 = 0.
    kld_elem = 1.0 + logvar - mu * mu - std * std                        # (TB, 128)
    row = i * tb + jax.lax.broadcasted_iota(jnp.int32, (tb, 1), 0)
    kld_elem = jnp.where(row < batch, kld_elem, 0.0)   # drop padded batch rows
    kld_ref[0, 0] = -0.5 * jnp.sum(kld_elem)


def pack_params(params):
    """f32 nn.Linear-style params -> (bf16 weights, f32 biases) in kernel layout."""
    w1, b1, w21, b21, w22, b22 = params
    w1_p = jnp.zeros((D_IN, D_HID_P), jnp.bfloat16)
    w1_p = w1_p.at[:, :D_HID].set(w1.astype(jnp.bfloat16))
    b1_p = jnp.zeros((1, D_HID_P), jnp.float32).at[:, :D_HID].set(b1.astype(jnp.float32))

    wh_p = jnp.zeros((D_HID_P, D_HEADS_P), jnp.bfloat16)
    wh_p = wh_p.at[:D_HID, :D_LAT].set(w21.astype(jnp.bfloat16))
    wh_p = wh_p.at[:D_HID, D_LAT_P:D_LAT_P + D_LAT].set(w22.astype(jnp.bfloat16))
    bh_p = jnp.zeros((1, D_HEADS_P), jnp.float32)
    bh_p = bh_p.at[:, :D_LAT].set(b21.astype(jnp.float32))
    bh_p = bh_p.at[:, D_LAT_P:D_LAT_P + D_LAT].set(b22.astype(jnp.float32))
    return w1_p, b1_p, wh_p, bh_p


def encoder_forward(x, packed_params, eps):
    """x: (B, 784) f32.  eps: (B, 128) (lane-aligned; only cols [:20] used) or (B, 20)
    standard-normal noise.  Returns (z (B, 20) f32, KLD scalar f32)."""
    B = x.shape[0]
    w1_p, b1_p, wh_p, bh_p = packed_params

    if B >= 128:
        TB = min(512, _round_up(B, 128))   # MXU-grain aligned, amortizes per-step overhead
    else:
        TB = _round_up(B, 8)
    B_pad = _round_up(B, TB)
    grid = (B_pad // TB,)

    x = x.astype(jnp.float32)
    eps = eps.astype(jnp.float32)
    if eps.shape[1] == D_LAT:                          # accept unpadded noise too
        eps = jnp.pad(eps, ((0, 0), (0, D_LAT_P - D_LAT)))
    if B_pad != B:                                     # only a ragged last tile pads
        x = jnp.pad(x, ((0, B_pad - B), (0, 0)))
        eps = jnp.pad(eps, ((0, B_pad - B), (0, 0)))

    kernel = functools.partial(encoder_kernel, tb=TB, batch=B)

    z_p, kld_parts = pl.pallas_call(
        kernel,
        out_shape=(
            jax.ShapeDtypeStruct((B_pad, D_LAT_P), jnp.float32),
            jax.ShapeDtypeStruct((grid[0], 1), jnp.float32),
        ),
        grid_spec=pltpu.PrefetchScalarGridSpec(
            num_scalar_prefetch=0,
            grid=grid,
            in_specs=[
                pl.BlockSpec((TB, D_IN), lambda i: (i, 0)),             # x tile streams (f32)
                pl.BlockSpec((D_IN, D_HID_P), lambda i: (0, 0)),        # W1 resident
                pl.BlockSpec((1, D_HID_P), lambda i: (0, 0)),           # b1 resident
                pl.BlockSpec((D_HID_P, D_HEADS_P), lambda i: (0, 0)),   # fused heads W resident
                pl.BlockSpec((1, D_HEADS_P), lambda i: (0, 0)),         # fused heads b resident
                pl.BlockSpec((TB, D_LAT_P), lambda i: (i, 0)),          # eps tile streams
            ],
            out_specs=(
                pl.BlockSpec((TB, D_LAT_P), lambda i: (i, 0)),          # z slab (lane-dense)
                pl.BlockSpec((1, 1), lambda i: (i, 0),
                             memory_space=pltpu.MemorySpace.SMEM),      # per-tile KLD partial
            ),
        ),
        compiler_params=pltpu.CompilerParams(
            # Per-tile KLD partials are independent -> batch axis is parallel
            # (lets v7x shard the grid across both TensorCores).
            dimension_semantics=("parallel",),
            vmem_limit_bytes=32 * 1024 * 1024,
        ),
    )(x, w1_p, b1_p, wh_p, bh_p, eps)

    kld = jnp.sum(kld_parts)
    return z_p[:B, :D_LAT], kld


def init_params(key):
    """Deterministic init mimicking PyTorch nn.Linear default (U[-1/sqrt(in), 1/sqrt(in)])."""
    ks = jax.random.split(key, 6)

    def linear(kw, kb, fan_in, fan_out):
        bound = 1.0 / jnp.sqrt(float(fan_in))
        w = jax.random.uniform(kw, (fan_in, fan_out), jnp.float32, -bound, bound)
        b = jax.random.uniform(kb, (1, fan_out), jnp.float32, -bound, bound)
        return w, b

    w1, b1 = linear(ks[0], ks[1], D_IN, D_HID)
    w21, b21 = linear(ks[2], ks[3], D_HID, D_LAT)
    w22, b22 = linear(ks[4], ks[5], D_HID, D_LAT)
    return (w1, b1, w21, b21, w22, b22)


if __name__ == "__main__":
    key = jax.random.PRNGKey(0)
    k_params, k_x, k_eps = jax.random.split(key, 3)

    B = 8
    params = init_params(k_params)
    packed = pack_params(params)
    x = jax.random.normal(k_x, (B, D_IN), jnp.float32)
    # Fresh N(0,1) noise sampled at the lane-aligned width; only cols [:20] are used.
    eps_full = jax.random.normal(k_eps, (B, D_LAT_P), jnp.float32)

    z, kld = encoder_forward(x, packed, eps_full)
    jax.block_until_ready((z, kld))

    # Reference in plain JAX with the SAME bf16-operand / f32-accumulate matmuls
    # (separate, unfused heads) to validate fusion, lane-alignment and slicing.
    w1, b1, w21, b21, w22, b22 = params
    eps = eps_full[:, :D_LAT]
    bf = jnp.bfloat16
    h1 = jnp.maximum(
        jnp.dot(x.astype(bf), w1.astype(bf), preferred_element_type=jnp.float32) + b1, 0.0)
    mu = jnp.dot(h1.astype(bf), w21.astype(bf), preferred_element_type=jnp.float32) + b21
    logvar = jnp.dot(h1.astype(bf), w22.astype(bf), preferred_element_type=jnp.float32) + b22
    z_ref = eps * jnp.exp(0.5 * logvar) + mu
    kld_ref = -0.5 * jnp.sum(1.0 + logvar - mu ** 2 - jnp.exp(logvar))

    assert z.shape == (B, D_LAT)
    assert jnp.allclose(z, z_ref, atol=1e-2, rtol=1e-2), "z mismatch"
    assert jnp.allclose(kld, kld_ref, atol=5e-2, rtol=1e-2), "KLD mismatch"

    print("KERNEL_OK")
</pallas_src>

<mosaic_0001>
module attributes {stable_mosaic.version = 11 : i64} {
  func.func @encoder_kernel(%arg0: i32, %arg1: memref<8x784xf32, #tpu.memory_space<vmem>>, %arg2: memref<784x512xbf16, #tpu.memory_space<vmem>>, %arg3: memref<1x512xf32, #tpu.memory_space<vmem>>, %arg4: memref<512x256xbf16, #tpu.memory_space<vmem>>, %arg5: memref<1x256xf32, #tpu.memory_space<vmem>>, %arg6: memref<8x128xf32, #tpu.memory_space<vmem>>, %arg7: memref<8x128xf32, #tpu.memory_space<vmem>>, %arg8: memref<1x1xf32, #tpu.memory_space<smem>>) attributes {dimension_semantics = [#tpu.dimension_semantics<parallel>], iteration_bounds = array<i64: 1>, scalar_prefetch = 0 : i64, scratch_operands = 0 : i64, tpu.core_type = #tpu.core_type<tc>, window_params = [{transform_indices = @transform_0, window_bounds = array<i64: 8, 784>}, {pipeline_mode = #tpu.pipeline_mode<synchronous>, transform_indices = @transform_1, window_bounds = array<i64: 784, 512>}, {pipeline_mode = #tpu.pipeline_mode<synchronous>, transform_indices = @transform_2, window_bounds = array<i64: 1, 512>}, {pipeline_mode = #tpu.pipeline_mode<synchronous>, transform_indices = @transform_3, window_bounds = array<i64: 512, 256>}, {pipeline_mode = #tpu.pipeline_mode<synchronous>, transform_indices = @transform_4, window_bounds = array<i64: 1, 256>}, {transform_indices = @transform_5, window_bounds = array<i64: 8, 128>}, {transform_indices = @transform_6, window_bounds = array<i64: 8, 128>}, {transform_indices = @transform_7, window_bounds = array<i64: 1, 1>}]} {
    %c0 = arith.constant 0 : index
    %c0_0 = arith.constant 0 : index
    %0 = vector.load %arg1[%c0, %c0_0] : memref<8x784xf32, #tpu.memory_space<vmem>>, vector<8x784xf32>
    %1 = arith.truncf %0 : vector<8x784xf32> to vector<8x784xbf16>
    %c0_1 = arith.constant 0 : index
    %c0_2 = arith.constant 0 : index
    %2 = vector.load %arg2[%c0_1, %c0_2] : memref<784x512xbf16, #tpu.memory_space<vmem>>, vector<784x512xbf16>
    %cst = arith.constant dense<0.000000e+00> : vector<8x512xf32>
    %3 = tpu.matmul %1, %2, %cst {dimension_numbers = #tpu.dot_dimension_numbers<[1], [0], [0], [1], [0, 0, 1, 1], [], []>} : vector<8x784xbf16>, vector<784x512xbf16>, vector<8x512xf32> -> vector<8x512xf32>
    %c0_3 = arith.constant 0 : index
    %c0_4 = arith.constant 0 : index
    %4 = vector.load %arg3[%c0_3, %c0_4] : memref<1x512xf32, #tpu.memory_space<vmem>>, vector<1x512xf32>
    %5 = vector.broadcast %4 : vector<1x512xf32> to vector<8x512xf32>
    %6 = arith.addf %3, %5 : vector<8x512xf32>
    %cst_5 = arith.constant 0.000000e+00 : f32
    %7 = vector.broadcast %cst_5 : f32 to vector<8x512xf32>
    %8 = arith.maximumf %6, %7 : vector<8x512xf32>
    %9 = arith.truncf %8 : vector<8x512xf32> to vector<8x512xbf16>
    %c0_6 = arith.constant 0 : index
    %c0_7 = arith.constant 0 : index
    %10 = vector.load %arg4[%c0_6, %c0_7] : memref<512x256xbf16, #tpu.memory_space<vmem>>, vector<512x256xbf16>
    %cst_8 = arith.constant dense<0.000000e+00> : vector<8x256xf32>
    %11 = tpu.matmul %9, %10, %cst_8 {dimension_numbers = #tpu.dot_dimension_numbers<[1], [0], [0], [1], [0, 0, 1, 1], [], []>} : vector<8x512xbf16>, vector<512x256xbf16>, vector<8x256xf32> -> vector<8x256xf32>
    %c0_9 = arith.constant 0 : index
    %c0_10 = arith.constant 0 : index
    %12 = vector.load %arg5[%c0_9, %c0_10] : memref<1x256xf32, #tpu.memory_space<vmem>>, vector<1x256xf32>
    %13 = vector.broadcast %12 : vector<1x256xf32> to vector<8x256xf32>
    %14 = arith.addf %11, %13 : vector<8x256xf32>
    %15 = vector.extract_strided_slice %14 {offsets = [0, 0], sizes = [8, 128], strides = [1, 1]} : vector<8x256xf32> to vector<8x128xf32>
    %16 = vector.extract_strided_slice %14 {offsets = [0, 128], sizes = [8, 128], strides = [1, 1]} : vector<8x256xf32> to vector<8x128xf32>
    %cst_11 = arith.constant 5.000000e-01 : f32
    %17 = vector.broadcast %cst_11 : f32 to vector<8x128xf32>
    %18 = arith.mulf %17, %16 : vector<8x128xf32>
    %19 = math.exp %18 : vector<8x128xf32>
    %c0_12 = arith.constant 0 : index
    %c0_13 = arith.constant 0 : index
    %20 = vector.load %arg6[%c0_12, %c0_13] : memref<8x128xf32, #tpu.memory_space<vmem>>, vector<8x128xf32>
    %21 = arith.mulf %20, %19 : vector<8x128xf32>
    %22 = arith.addf %21, %15 : vector<8x128xf32>
    %c0_14 = arith.constant 0 : index
    %c0_15 = arith.constant 0 : index
    %23 = vector.load %arg7[%c0_14, %c0_15] : memref<8x128xf32, #tpu.memory_space<vmem>>, vector<8x128xf32>
    tpu.vector_store %arg7[%c0_14, %c0_15], %22 {strides = array<i32>} : memref<8x128xf32, #tpu.memory_space<vmem>>, vector<8x128xf32>,
    %cst_16 = arith.constant 1.000000e+00 : f32
    %24 = vector.broadcast %cst_16 : f32 to vector<8x128xf32>
    %25 = arith.addf %24, %16 : vector<8x128xf32>
    %26 = arith.mulf %15, %15 : vector<8x128xf32>
    %27 = arith.subf %25, %26 : vector<8x128xf32>
    %28 = arith.mulf %19, %19 : vector<8x128xf32>
    %29 = arith.subf %27, %28 : vector<8x128xf32>
    %c8_i32 = arith.constant 8 : i32
    %30 = arith.muli %arg0, %c8_i32 : i32
    %31 = tpu.iota {dimensions = array<i32: 0>} : vector<8x1xi32>
    %32 = vector.broadcast %30 : i32 to vector<8x1xi32>
    %33 = arith.addi %32, %31 : vector<8x1xi32>
    %c8_i32_17 = arith.constant 8 : i32
    %34 = vector.broadcast %c8_i32_17 : i32 to vector<8x1xi32>
    %35 = arith.cmpi slt, %33, %34 : vector<8x1xi32>
    %cst_18 = arith.constant 0.000000e+00 : f32
    %36 = vector.shape_cast %35 : vector<8x1xi1> to vector<8x1xi1>
    %37 = vector.broadcast %36 : vector<8x1xi1> to vector<8x128xi1>
    %38 = vector.broadcast %cst_18 : f32 to vector<8x128xf32>
    %39 = arith.select %37, %29, %38 : vector<8x128xi1>, vector<8x128xf32>
    %40 = vector.shape_cast %39 : vector<8x128xf32> to vector<1x8x128xf32>
    %cst_19 = arith.constant dense<0.000000e+00> : vector<1xf32>
    %41 = vector.multi_reduction <add>, %40, %cst_19 [1, 2] : vector<1x8x128xf32> to vector<1xf32>
    %42 = vector.shape_cast %41 : vector<1xf32> to vector<1x1x1xf32>
    %43 = vector.extract %42[0, 0, 0] : f32 from vector<1x1x1xf32>
    %cst_20 = arith.constant -5.000000e-01 : f32
    %44 = arith.mulf %cst_20, %43 : f32
    %c0_21 = arith.constant 0 : index
    %c0_22 = arith.constant 0 : index
    %45 = memref.load %arg8[%c0_21, %c0_22] : memref<1x1xf32, #tpu.memory_space<smem>>
    memref.store %44, %arg8[%c0_21, %c0_22] : memref<1x1xf32, #tpu.memory_space<smem>>
    return
  }
  func.func @transform_0(%arg0: i32) -> (i32, i32) {
    %c0_i32 = arith.constant 0 : i32
    %c0_i32_0 = arith.constant 0 : i32
    return %arg0, %c0_i32 : i32, i32
  }
  func.func @transform_1(%arg0: i32) -> (i32, i32) {
    %c0_i32 = arith.constant 0 : i32
    %c0_i32_0 = arith.constant 0 : i32
    %c0_i32_1 = arith.constant 0 : i32
    return %c0_i32, %c0_i32_0 : i32, i32
  }
  func.func @transform_2(%arg0: i32) -> (i32, i32) {
    %c0_i32 = arith.constant 0 : i32
    %c0_i32_0 = arith.constant 0 : i32
    %c0_i32_1 = arith.constant 0 : i32
    return %c0_i32, %c0_i32_0 : i32, i32
  }
  func.func @transform_3(%arg0: i32) -> (i32, i32) {
    %c0_i32 = arith.constant 0 : i32
    %c0_i32_0 = arith.constant 0 : i32
    %c0_i32_1 = arith.constant 0 : i32
    return %c0_i32, %c0_i32_0 : i32, i32
  }
  func.func @transform_4(%arg0: i32) -> (i32, i32) {
    %c0_i32 = arith.constant 0 : i32
    %c0_i32_0 = arith.constant 0 : i32
    %c0_i32_1 = arith.constant 0 : i32
    return %c0_i32, %c0_i32_0 : i32, i32
  }
  func.func @transform_5(%arg0: i32) -> (i32, i32) {
    %c0_i32 = arith.constant 0 : i32
    %c0_i32_0 = arith.constant 0 : i32
    return %arg0, %c0_i32 : i32, i32
  }
  func.func @transform_6(%arg0: i32) -> (i32, i32) {
    %c0_i32 = arith.constant 0 : i32
    %c0_i32_0 = arith.constant 0 : i32
    return %arg0, %c0_i32 : i32, i32
  }
  func.func @transform_7(%arg0: i32) -> (i32, i32) {
    %c0_i32 = arith.constant 0 : i32
    %c0_i32_0 = arith.constant 0 : i32
    return %arg0, %c0_i32 : i32, i32
  }
}

</mosaic_0001>

<bundles_post_ra>
// kernel: tpu_custom_call.1
= control target key start
LH: loop header
LB: loop body
LE: loop exit
PB: predicated region body
PF: predicated region fallthrough
CT: control target
= control target key end

     0   :  { %13 = vsyncpa [#allocation3], 0  ;;  %s3874_s0 = inlined_call_operand.hbm [shape: f32[8,784], index: 0, kind: input, shape index: {}]   ;;  %s3875_s1 = inlined_call_operand.hbm [shape: bf16[784,512], index: 1, kind: input, shape index: {}]   ;;  %s3876_s2 = inlined_call_operand.hbm [shape: f32[1,512], index: 2, kind: input, shape index: {}]   ;;  %s3877_s3 = inlined_call_operand.hbm [shape: bf16[512,256], index: 3, kind: input, shape index: {}]   ;;  %s3878_s4 = inlined_call_operand.vmem [shape: f32[1,256], index: 4, kind: input, shape index: {}]   ;;  %s3879_s5 = inlined_call_operand.hbm [shape: f32[8,128], index: 5, kind: input, shape index: {}]   ;;  %s3880_s6 = inlined_call_operand.hbm [shape: f32[8,128], index: 6, kind: output, shape index: {0}]   ;;  %s3881_s7 = inlined_call_operand.hbm [shape: f32[1,1], index: 7, kind: output, shape index: {1}]  }
   0x1   :  { %14 = vsyncpa [#allocation7], 0 }
   0x2   :  { %15 = vsyncpa [#allocation10], 0 }
   0x3   :  { %16 = vsyncpa [#allocation4], 0  ;;  %s33_s26 = sshll.u32 %s3875_s1, 4  ;;  %s34_s26 = int_to_ptr.hbm [resolvable:$true] %s33_s26 }
   0x4   :  { %17 = vsyncpa [#allocation5], 0  ;;  %s3722_s27 = smov [#allocation6]   ;;  %s57_s8 = sshll.u32 %s3877_s3, 4  ;;  %s58_s8 = int_to_ptr.hbm [resolvable:$true] %s57_s8 }
   0x5   :  { %s35_s28 = sshll.u32 %s3722_s27, 4  ;;  %s3723_s9 = smov 256   ;;  %s36_s28 = int_to_ptr.vmem [resolvable:$true] %s35_s28 }
   0x6   :  { %s3724_s10 = smov 16   ;;  %s3725_s11 = smov [#allocation9]  }
   0x7   :  { %41 = dma.hbm_to_vmem [thread:$0]  %s34_s26, 25088, %s36_s28, [#allocation7], %s3723_s9, %s3723_s9, %s3724_s10  }
   0x8   :  { %s59_s12 = sshll.u32 %s3725_s11, 4  ;;  %s3726_s13 = smov 128   ;;  %s60_s12 = int_to_ptr.vmem [resolvable:$true] %s59_s12 }
   0x9   :  { %s3727_s14 = smov 8   ;;  %s23_s16 = sshll.u32 %s3874_s0, 4  ;;  %s24_s16 = int_to_ptr.hbm [resolvable:$true] %s23_s16 }
   0xa   :  { %65 = dma.hbm_to_vmem [thread:$0]  %s58_s8, 8192, %s60_s12, [#allocation10], %s3726_s13, %s3726_s13, %s3727_s14  }
   0xb   :  { %s3728_s17 = smov [#allocation2]   ;;  %s47_s20 = sshll.u32 %s3876_s2, 4  ;;  %s48_s20 = int_to_ptr.hbm [resolvable:$true] %s47_s20 }
   0xc   :  { %s25_s18 = sshll.u32 %s3728_s17, 4  ;;  %s3729_s21 = smov [#allocation8]   ;;  %s26_s18 = int_to_ptr.vmem [resolvable:$true] %s25_s18 }
   0xd   :  { %28 = dma.hbm_to_vmem [thread:$0]  %s24_s16, 896, %s26_s18, [#allocation3]  }
   0xe   :  { %s49_s22 = sshll.u32 %s3729_s21, 4  ;;  %s73_s25 = sshll.u32 %s3879_s5, 4  ;;  %s50_s22 = int_to_ptr.vmem [resolvable:$true] %s49_s22  ;;  %s74_s25 = int_to_ptr.hbm [resolvable:$true] %s73_s25 }
   0xf   :  { %52 = dma.hbm_to_vmem [thread:$0]  %s48_s20, 64, %s50_s22, [#allocation7]  }
  0x10   :  { %s3730_s0 = smov [#allocation11]  }
  0x11   :  { %s75_s26 = sshll.u32 %s3730_s0, 4  ;;  %s76_s26 = int_to_ptr.vmem [resolvable:$true] %s75_s26 }
  0x12   :  { %78 = dma.hbm_to_vmem [thread:$0]  %s74_s25, 128, %s76_s26, [#allocation10]  }
  0x13   :  { %3712 = dma.done.wait [#allocation3], 896  }
  0x14   :  { %3713 = vsyncadd [#allocation3], 4294966400 }
  0x15   :  { %3714 = dma.done.wait [#allocation7], 25152  }
  0x16   :  { %3715 = vsyncadd [#allocation7], 4294942144 }
  0x17   :  { %3716 = dma.done.wait [#allocation10], 8320  }
  0x18   :  { %3717 = vsyncadd [#allocation10], 4294958976  ;;  %v2351_v0 = vld [vmem:[#allocation6 + $0xe0] sm:$0xf]  ;;  %v3311_v1 = vld [vmem:[#allocation6 + $0xec] sm:$0xf0] }
  0x19   :  { %v2479_v2 = vld [vmem:[#allocation6 + $0x1e0] sm:$0xf]  ;;  %v2352_v3 = vor.u32 %v3311_v1, %v2351_v0  ;;  %v3343_v4 = vld [vmem:[#allocation6 + $0x1ec] sm:$0xf0]  ;;  %vm1300_vm0 = vcmask 130048   ;;  %s2210_s30 = sshll.u32 %s3880_s6, 4  ;;  %s2211_s30 = int_to_ptr.hbm [resolvable:$true] %s2210_s30 }
  0x1a   :  { %v2607_v5 = vld [vmem:[#allocation6 + $0x2e0] sm:$0xf]  ;;  %v3375_v6 = vld [vmem:[#allocation6 + $0x2ec] sm:$0xf0]  ;;  %v2480_v7 = vor.u32 %v3343_v4, %v2479_v2  ;;  %s2219_s10 = sshll.u32 %s3881_s7, 4  ;;  %s3732_s6 = smov [#allocation13]   ;;  %s2220_s10 = int_to_ptr.hbm [resolvable:$true] %s2219_s10 }
  0x1b   :  { %v2608_v8 = vor.u32 %v3375_v6, %v2607_v5  ;;  %v2735_v9 = vld [vmem:[#allocation6 + $0x3e0] sm:$0xf]  ;;  %v3407_v10 = vld [vmem:[#allocation6 + $0x3ec] sm:$0xf0]  ;;  %1304 = vmatpush.bf16.msra.mxu0 %v2352_v3 }
  0x1c   :  { %v2335_v11 = vld [vmem:[#allocation6 + $0xc0] sm:$0xf]  ;;  %v2736_v12 = vor.u32 %v3407_v10, %v2735_v9  ;;  %v3307_v13 = vld [vmem:[#allocation6 + $0xcc] sm:$0xf0]  ;;  %1317 = vmatpush.bf16.msra.mxu1 %v2480_v7 }
  0x1d   :  { %v2463_v14 = vld [vmem:[#allocation6 + $0x1c0] sm:$0xf]  ;;  %v3339_v15 = vld [vmem:[#allocation6 + $0x1cc] sm:$0xf0]  ;;  %1330 = vmatpush.bf16.msra.mxu2 %v2608_v8  ;;  %v2336_v16 = vor.u32 %v3307_v13, %v2335_v11 }
  0x1e   :  { %v2464_v17 = vor.u32 %v3339_v15, %v2463_v14  ;;  %v2591_v18 = vld [vmem:[#allocation6 + $0x2c0] sm:$0xf]  ;;  %v3371_v19 = vld [vmem:[#allocation6 + $0x2cc] sm:$0xf0]  ;;  %1343 = vmatpush.bf16.msra.mxu3 %v2736_v12 }
  0x1f   :  { %v2719_v20 = vld [vmem:[#allocation6 + $0x3c0] sm:$0xf]  ;;  %v2592_v21 = vor.u32 %v3371_v19, %v2591_v18  ;;  %v3403_v22 = vld [vmem:[#allocation6 + $0x3cc] sm:$0xf0]  ;;  %1305 = vmatpush.bf16.msra.mxu0 %v2336_v16 }
  0x20   :  { %v2319_v23 = vld [vmem:[#allocation6 + $0xa0] sm:$0xf]  ;;  %v3303_v24 = vld [vmem:[#allocation6 + $0xac] sm:$0xf0]  ;;  %v2720_v25 = vor.u32 %v3403_v22, %v2719_v20  ;;  %1318 = vmatpush.bf16.msra.mxu1 %v2464_v17 }
  0x21   :  { %v2447_v26 = vld [vmem:[#allocation6 + $0x1a0] sm:$0xf]  ;;  %v3335_v27 = vld [vmem:[#allocation6 + $0x1ac] sm:$0xf0]  ;;  %v2320_v29 = vor.u32 %v3303_v24, %v2319_v23  ;;  %1331 = vmatpush.bf16.msra.mxu2 %v2592_v21 }
  0x22   :  { %v2575_v28 = vld [vmem:[#allocation6 + $0x2a0] sm:$0xf]  ;;  %v3367_v30 = vld [vmem:[#allocation6 + $0x2ac] sm:$0xf0]  ;;  %v2448_v33 = vor.u32 %v3335_v27, %v2447_v26  ;;  %1344 = vmatpush.bf16.msra.mxu3 %v2720_v25 }
  0x23   :  { %v2703_v31 = vld [vmem:[#allocation6 + $0x3a0] sm:$0xf]  ;;  %v3399_v32 = vld [vmem:[#allocation6 + $0x3ac] sm:$0xf0]  ;;  %v2576_v34 = vor.u32 %v3367_v30, %v2575_v28  ;;  %1306 = vmatpush.bf16.msra.mxu0 %v2320_v29 }
  0x24   :  { %v2303_v35 = vld [vmem:[#allocation6 + $0x80] sm:$0xf]  ;;  %v3299_v36 = vld [vmem:[#allocation6 + $0x8c] sm:$0xf0]  ;;  %v2704_v38 = vor.u32 %v3399_v32, %v2703_v31  ;;  %1319 = vmatpush.bf16.msra.mxu1 %v2448_v33  ;;  %v3309_v33 = vld [vmem:[#allocation6 + $0xe4] sm:$0xf] }
  0x25   :  { %v2431_v37 = vld [vmem:[#allocation6 + $0x180] sm:$0xf]  ;;  %v3331_v39 = vld [vmem:[#allocation6 + $0x18c] sm:$0xf0]  ;;  %v2304_v44 = vor.u32 %v3299_v36, %v2303_v35  ;;  %1332 = vmatpush.bf16.msra.mxu2 %v2576_v34  ;;  %v2353_v34 = vld [vmem:[#allocation6 + $0xf0] sm:$0xf0] }
  0x26   :  { %v2559_v40 = vld [vmem:[#allocation6 + $0x280] sm:$0xf]  ;;  %v3363_v41 = vld [vmem:[#allocation6 + $0x28c] sm:$0xf0]  ;;  %v2432_v45 = vor.u32 %v3331_v39, %v2431_v37  ;;  %1345 = vmatpush.bf16.msra.mxu3 %v2704_v38  ;;  %v102_v35 = vld [vmem:[#allocation2 + $0x10] sm:$0xff] }
  0x27   :  { %v2687_v42 = vld [vmem:[#allocation6 + $0x380] sm:$0xf]  ;;  %v3395_v43 = vld [vmem:[#allocation6 + $0x38c] sm:$0xf0]  ;;  %v2560_v46 = vor.u32 %v3363_v41, %v2559_v40  ;;  %1307 = vmatpush.bf16.msra.mxu0 %v2304_v44  ;;  %v100_v40 = vld [vmem:[#allocation2] sm:$0xff] }
  0x28   :  { %v2287_v47 = vld [vmem:[#allocation6 + $0x60] sm:$0xf]  ;;  %v3295_v48 = vld [vmem:[#allocation6 + $0x6c] sm:$0xf0]  ;;  %v2688_v50 = vor.u32 %v3395_v43, %v2687_v42  ;;  %1320 = vmatpush.bf16.msra.mxu1 %v2432_v45  ;;  %v3341_v43 = vld [vmem:[#allocation6 + $0x1e4] sm:$0xf] }
  0x29   :  { %v2415_v49 = vld [vmem:[#allocation6 + $0x160] sm:$0xf]  ;;  %v3327_v51 = vld [vmem:[#allocation6 + $0x16c] sm:$0xf0]  ;;  %v2288_v56 = vor.u32 %v3295_v48, %v2287_v47  ;;  %1333 = vmatpush.bf16.msra.mxu2 %v2560_v46  ;;  %v2481_v44 = vld [vmem:[#allocation6 + $0x1f0] sm:$0xf0]  ;;  %v2356_v47 = vor.u32 %v3309_v33, %v2353_v34 }
  0x2a   :  { %v2543_v52 = vld [vmem:[#allocation6 + $0x260] sm:$0xf]  ;;  %v3359_v53 = vld [vmem:[#allocation6 + $0x26c] sm:$0xf0]  ;;  %v2416_v57 = vor.u32 %v3327_v51, %v2415_v49  ;;  %1346 = vmatpush.bf16.msra.mxu3 %v2688_v50  ;;  %v3788_v51 = vpack.c.bf16 %v102_v35, %v102_v35  ;;  %v3325_v35 = vld [vmem:[#allocation6 + $0x164] sm:$0xf] }
  0x2b   :  { %v2671_v54 = vld [vmem:[#allocation6 + $0x360] sm:$0xf]  ;;  %v3391_v55 = vld [vmem:[#allocation6 + $0x36c] sm:$0xf0]  ;;  %v2544_v58 = vor.u32 %v3359_v53, %v2543_v52  ;;  %1308 = vmatpush.bf16.msra.mxu0 %v2288_v56  ;;  %v3305_v53 = vld [vmem:[#allocation6 + $0xc4] sm:$0xf] }
  0x2c   :  { %v2271_v59 = vld [vmem:[#allocation6 + $0x40] sm:$0xf]  ;;  %v3291_v60 = vld [vmem:[#allocation6 + $0x4c] sm:$0xf0]  ;;  %v2672_v62 = vor.u32 %v3391_v55, %v2671_v54  ;;  %1321 = vmatpush.bf16.msra.mxu1 %v2416_v57  ;;  %v2337_v54 = vld [vmem:[#allocation6 + $0xd0] sm:$0xf0]  ;;  %v3790_v55 = vpack.c.bf16 %v100_v40, %v100_v40 }
  0x2d   :  { %v2399_v61 = vld [vmem:[#allocation6 + $0x140] sm:$0xf]  ;;  %v3323_v63 = vld [vmem:[#allocation6 + $0x14c] sm:$0xf0]  ;;  %v2272_v4 = vor.u32 %v3291_v60, %v2271_v59  ;;  %1334 = vmatpush.bf16.msra.mxu2 %v2544_v58  ;;  %v2484_v59 = vor.u32 %v3341_v43, %v2481_v44  ;;  %v3289_v43 = vld [vmem:[#allocation6 + $0x44] sm:$0xf] }
  0x2e   :  { %v2527_v0 = vld [vmem:[#allocation6 + $0x240] sm:$0xf]  ;;  %v3355_v1 = vld [vmem:[#allocation6 + $0x24c] sm:$0xf0]  ;;  %v2400_v5 = vor.u32 %v3323_v63, %v2399_v61  ;;  %1347 = vmatpush.bf16.msra.mxu3 %v2672_v62  ;;  %v3337_v61 = vld [vmem:[#allocation6 + $0x1c4] sm:$0xf] }
  0x2f   :  { %v2655_v2 = vld [vmem:[#allocation6 + $0x340] sm:$0xf]  ;;  %v3387_v3 = vld [vmem:[#allocation6 + $0x34c] sm:$0xf0]  ;;  %v2528_v6 = vor.u32 %v3355_v1, %v2527_v0  ;;  %1309 = vmatpush.bf16.msra.mxu0 %v2272_v4  ;;  %v2465_v62 = vld [vmem:[#allocation6 + $0x1d0] sm:$0xf0]  ;;  %v2340_v0 = vor.u32 %v3305_v53, %v2337_v54 }
  0x30   :  { %v2255_v7 = vld [vmem:[#allocation6 + $0x20] sm:$0xf]  ;;  %v3287_v8 = vld [vmem:[#allocation6 + $0x2c] sm:$0xf0]  ;;  %v2656_v10 = vor.u32 %v3387_v3, %v2655_v2  ;;  %1322 = vmatpush.bf16.msra.mxu1 %v2400_v5  ;;  %v3301_v5 = vld [vmem:[#allocation6 + $0xa4] sm:$0xf] }
  0x31   :  { %v2383_v9 = vld [vmem:[#allocation6 + $0x120] sm:$0xf]  ;;  %v3319_v11 = vld [vmem:[#allocation6 + $0x12c] sm:$0xf0]  ;;  %v2256_v16 = vor.u32 %v3287_v8, %v2255_v7  ;;  %1335 = vmatpush.bf16.msra.mxu2 %v2528_v6  ;;  %v2321_v6 = vld [vmem:[#allocation6 + $0xb0] sm:$0xf0]  ;;  %v2468_v8 = vor.u32 %v3337_v61, %v2465_v62 }
  0x32   :  { %v2511_v12 = vld [vmem:[#allocation6 + $0x220] sm:$0xf]  ;;  %v3351_v13 = vld [vmem:[#allocation6 + $0x22c] sm:$0xf0]  ;;  %v2384_v20 = vor.u32 %v3319_v11, %v2383_v9  ;;  %1348 = vmatpush.bf16.msra.mxu3 %v2656_v10  ;;  %v3333_v10 = vld [vmem:[#allocation6 + $0x1a4] sm:$0xf] }
  0x33   :  { %v2639_v14 = vld [vmem:[#allocation6 + $0x320] sm:$0xf]  ;;  %v3383_v15 = vld [vmem:[#allocation6 + $0x32c] sm:$0xf0]  ;;  %v2512_v21 = vor.u32 %v3351_v13, %v2511_v12  ;;  %1310 = vmatpush.bf16.msra.mxu0 %v2256_v16  ;;  %v2449_v11 = vld [vmem:[#allocation6 + $0x1b0] sm:$0xf0]  ;;  %v2324_v13 = vor.u32 %v3301_v5, %v2321_v6 }
  0x34   :  { %v2239_v17 = vld [vmem:[#allocation6] sm:$0xf]  ;;  %v3283_v18 = vld [vmem:[#allocation6 + $0xc] sm:$0xf0]  ;;  %v2640_v25 = vor.u32 %v3383_v15, %v2639_v14  ;;  %1323 = vmatpush.bf16.msra.mxu1 %v2384_v20  ;;  %v2452_v20 = vor.u32 %v3333_v10, %v2449_v11  ;;  %v2273_v44 = vld [vmem:[#allocation6 + $0x50] sm:$0xf0] }
  0x35   :  { %v2367_v19 = vld [vmem:[#allocation6 + $0x100] sm:$0xf]  ;;  %v3315_v22 = vld [vmem:[#allocation6 + $0x10c] sm:$0xf0]  ;;  %v2240_v32 = vor.u32 %v3283_v18, %v2239_v17  ;;  %1336 = vmatpush.bf16.msra.mxu2 %v2512_v21  ;;  %v3297_v18 = vld [vmem:[#allocation6 + $0x84] sm:$0xf] }
  0x36   :  { %v2495_v23 = vld [vmem:[#allocation6 + $0x200] sm:$0xf]  ;;  %v3347_v24 = vld [vmem:[#allocation6 + $0x20c] sm:$0xf0]  ;;  %v2368_v36 = vor.u32 %v3315_v22, %v2367_v19  ;;  %1349 = vmatpush.bf16.msra.mxu3 %v2640_v25  ;;  %v2305_v19 = vld [vmem:[#allocation6 + $0x90] sm:$0xf0] }
  0x37   :  { %v2623_v26 = vld [vmem:[#allocation6 + $0x300] sm:$0xf]  ;;  %v3379_v27 = vld [vmem:[#allocation6 + $0x30c] sm:$0xf0]  ;;  %v2496_v37 = vor.u32 %v3347_v24, %v2495_v23  ;;  %1311 = vmatpush.bf16.msra.mxu0 %v2240_v32  ;;  %v3329_v22 = vld [vmem:[#allocation6 + $0x184] sm:$0xf]  ;;  %v2308_v25 = vor.u32 %v3297_v18, %v2305_v19 }
  0x38   :  { %v2863_v28 = vld [vmem:[#allocation6 + $0x4e0] sm:$0xf]  ;;  %v3439_v29 = vld [vmem:[#allocation6 + $0x4ec] sm:$0xf0]  ;;  %v2624_v41 = vor.u32 %v3379_v27, %v2623_v26  ;;  %1324 = vmatpush.bf16.msra.mxu1 %v2368_v36  ;;  %v2433_v23 = vld [vmem:[#allocation6 + $0x190] sm:$0xf0] }
  0x39   :  { %v2991_v30 = vld [vmem:[#allocation6 + $0x5e0] sm:$0xf]  ;;  %v3471_v31 = vld [vmem:[#allocation6 + $0x5ec] sm:$0xf0]  ;;  %v2864_v42 = vor.u32 %v3439_v29, %v2863_v28  ;;  %1337 = vmatpush.bf16.msra.mxu2 %v2496_v37  ;;  %v106_v32 = vld [vmem:[#allocation2 + $0x30] sm:$0xff]  ;;  %v2436_v33 = vor.u32 %v3329_v22, %v2433_v23 }
  0x3a   :  { %v3007_v38 = vld [vmem:[#allocation6 + $0x600] sm:$0xf]  ;;  %v3475_v39 = vld [vmem:[#allocation6 + $0x60c] sm:$0xf0]  ;;  %v2992_v46 = vor.u32 %v3471_v31, %v2991_v30  ;;  %1350 = vmatpush.bf16.msra.mxu3 %v2624_v41  ;;  %1312 = vmatmul.bf16.vlgmr.msra.gmra.mxu0 %v3790_v55  ;;  %v3293_v30 = vld [vmem:[#allocation6 + $0x64] sm:$0xf] }
  0x3b   :  { %v103_v45 = vld [vmem:[#allocation2 + $0x18] sm:$0xff]  ;;  %v3435_v49 = vld [vmem:[#allocation6 + $0x4cc] sm:$0xf0]  ;;  %v3008_v56 = vor.u32 %v3475_v39, %v3007_v38  ;;  %1356 = vmatpush.bf16.msrb.mxu0 %v2864_v42  ;;  %v2289_v31 = vld [vmem:[#allocation6 + $0x70] sm:$0xf0] }
  0x3c   :  { %v2847_v48 = vld [vmem:[#allocation6 + $0x4c0] sm:$0xf]  ;;  %v3467_v52 = vld [vmem:[#allocation6 + $0x5cc] sm:$0xf0]  ;;  %v3792_v57 = vpack.c.bf16 %v103_v45, %v103_v45  ;;  %1369 = vmatpush.bf16.msrb.mxu1 %v2992_v46  ;;  %1338 = vmatmul.bf16.vlgmr.msra.gmra.mxu2 %v3788_v51  ;;  %v2417_v36 = vld [vmem:[#allocation6 + $0x170] sm:$0xf0]  ;;  %v2292_v38 = vor.u32 %v3293_v30, %v2289_v31  ;;  %v3800_v45 = vpack.c.bf16 %v106_v32, %v106_v32 }
  0x3d   :  { %v2975_v50 = vld [vmem:[#allocation6 + $0x5c0] sm:$0xf]  ;;  %v101_v58 = vld [vmem:[#allocation2 + $0x8] sm:$0xff]  ;;  %v2848_v60 = vor.u32 %v3435_v49, %v2847_v48  ;;  %1389 = vmatpush.bf16.msrb.mxu2 %v3008_v56  ;;  %v2420_v46 = vor.u32 %v3325_v35, %v2417_v36  ;;  %v3321_v48 = vld [vmem:[#allocation6 + $0x144] sm:$0xf] }
  0x3e   :  { %1395 = vmatpush.bf16.msrb.mxu3 %v2356_v47  ;;  %v2976_v63 = vor.u32 %v3467_v52, %v2975_v50  ;;  %v2831_v1 = vld [vmem:[#allocation6 + $0x4a0] sm:$0xf]  ;;  %v3431_v2 = vld [vmem:[#allocation6 + $0x4ac] sm:$0xf0]  ;;  %v3796_v7 = vpack.c.bf16 %v101_v58, %v101_v58  ;;  %v2401_v49 = vld [vmem:[#allocation6 + $0x150] sm:$0xf0]  ;;  %v2276_v52 = vor.u32 %v3289_v43, %v2273_v44 }
  0x3f   :  { %v2959_v3 = vld [vmem:[#allocation6 + $0x5a0] sm:$0xf]  ;;  %v3463_v4 = vld [vmem:[#allocation6 + $0x5ac] sm:$0xf0]  ;;  %1351 = vmatmul.bf16.vlgmr.msra.gmra.mxu3 %v3792_v57  ;;  %1357 = vmatpush.bf16.msrb.mxu0 %v2848_v60  ;;  %v2832_v9 = vor.u32 %v3431_v2, %v2831_v1  ;;  %v2257_v60 = vld [vmem:[#allocation6 + $0x30] sm:$0xf0]  ;;  %v2404_v61 = vor.u32 %v3321_v48, %v2401_v49 }
  0x40   :  { %1370 = vmatpush.bf16.msrb.mxu1 %v2976_v63  ;;  %v2960_v12 = vor.u32 %v3463_v4, %v2959_v3  ;;  %v2815_v14 = vld [vmem:[#allocation6 + $0x480] sm:$0xf]  ;;  %v3427_v15 = vld [vmem:[#allocation6 + $0x48c] sm:$0xf0]  ;;  %v3317_v63 = vld [vmem:[#allocation6 + $0x124] sm:$0xf] }
  0x41   :  { %1408 = vmatpush.bf16.msra.mxu2 %v2484_v59  ;;  %v2943_v16 = vld [vmem:[#allocation6 + $0x580] sm:$0xf]  ;;  %1325 = vmatmul.bf16.vlgmr.msra.gmra.mxu1 %v3796_v7  ;;  %v3459_v17 = vld [vmem:[#allocation6 + $0x58c] sm:$0xf0]  ;;  %v2816_v21 = vor.u32 %v3427_v15, %v2815_v14  ;;  %v3285_v59 = vld [vmem:[#allocation6 + $0x24] sm:$0xf] }
  0x42   :  { %1396 = vmatpush.bf16.msrb.mxu3 %v2340_v0  ;;  %v2944_v24 = vor.u32 %v3459_v17, %v2943_v16  ;;  %v2799_v26 = vld [vmem:[#allocation6 + $0x460] sm:$0xf]  ;;  %v3423_v27 = vld [vmem:[#allocation6 + $0x46c] sm:$0xf0]  ;;  %v2385_v0 = vld [vmem:[#allocation6 + $0x130] sm:$0xf0]  ;;  %v2260_v3 = vor.u32 %v3285_v59, %v2257_v60 }
  0x43   :  { %1358 = vmatpush.bf16.msrb.mxu0 %v2832_v9  ;;  %v2927_v28 = vld [vmem:[#allocation6 + $0x560] sm:$0xf]  ;;  %v3455_v29 = vld [vmem:[#allocation6 + $0x56c] sm:$0xf0]  ;;  %v2800_v34 = vor.u32 %v3423_v27, %v2799_v26  ;;  %v2241_v9 = vld [vmem:[#allocation6 + $0x10] sm:$0xf0]  ;;  %v2388_v14 = vor.u32 %v3317_v63, %v2385_v0 }
  0x44   :  { %1371 = vmatpush.bf16.msrb.mxu1 %v2960_v12  ;;  %v2928_v37 = vor.u32 %v3455_v29, %v2927_v28  ;;  %v2783_v39 = vld [vmem:[#allocation6 + $0x440] sm:$0xf]  ;;  %v3419_v40 = vld [vmem:[#allocation6 + $0x44c] sm:$0xf0]  ;;  %v3373_v10 = vld [vmem:[#allocation6 + $0x2e4] sm:$0xf] }
  0x45   :  { %1409 = vmatpush.bf16.msra.mxu2 %v2468_v8  ;;  %v2911_v41 = vld [vmem:[#allocation6 + $0x540] sm:$0xf]  ;;  %v3451_v42 = vld [vmem:[#allocation6 + $0x54c] sm:$0xf0]  ;;  %v2784_v47 = vor.u32 %v3419_v40, %v2783_v39  ;;  %v3281_v8 = vld [vmem:[#allocation6 + $0x4] sm:$0xf] }
  0x46   :  { %1397 = vmatpush.bf16.msrb.mxu3 %v2324_v13  ;;  %v2912_v50 = vor.u32 %v3451_v42, %v2911_v41  ;;  %v2767_v53 = vld [vmem:[#allocation6 + $0x420] sm:$0xf]  ;;  %v3415_v54 = vld [vmem:[#allocation6 + $0x42c] sm:$0xf0]  ;;  %v2609_v11 = vld [vmem:[#allocation6 + $0x2f0] sm:$0xf0] }
  0x47   :  { %1359 = vmatpush.bf16.msrb.mxu0 %v2816_v21  ;;  %v2895_v56 = vld [vmem:[#allocation6 + $0x520] sm:$0xf]  ;;  %v3447_v58 = vld [vmem:[#allocation6 + $0x52c] sm:$0xf0]  ;;  %v2768_v62 = vor.u32 %v3415_v54, %v2767_v53  ;;  %v3405_v12 = vld [vmem:[#allocation6 + $0x3e4] sm:$0xf] }
  0x48   :  { %1372 = vmatpush.bf16.msrb.mxu1 %v2944_v24  ;;  %v2751_v1 = vld [vmem:[#allocation6 + $0x400] sm:$0xf]  ;;  %v2896_v2 = vor.u32 %v3447_v58, %v2895_v56  ;;  %v3411_v4 = vld [vmem:[#allocation6 + $0x40c] sm:$0xf0]  ;;  %v2737_v13 = vld [vmem:[#allocation6 + $0x3f0] sm:$0xf0]  ;;  %v2612_v24 = vor.u32 %v3373_v10, %v2609_v11 }
  0x49   :  { %1410 = vmatpush.bf16.msra.mxu2 %v2452_v20  ;;  %v2879_v5 = vld [vmem:[#allocation6 + $0x500] sm:$0xf]  ;;  %v3443_v6 = vld [vmem:[#allocation6 + $0x50c] sm:$0xf0]  ;;  %v2752_v15 = vor.u32 %v3411_v4, %v2751_v1  ;;  %v3437_v16 = vld [vmem:[#allocation6 + $0x4e4] sm:$0xf]  ;;  %v2244_v20 = vor.u32 %v3281_v8, %v2241_v9 }
  0x4a   :  { %1398 = vmatpush.bf16.msrb.mxu3 %v2308_v25  ;;  %v2865_v17 = vld [vmem:[#allocation6 + $0x4f0] sm:$0xf0]  ;;  %v104_v18 = vld [vmem:[#allocation2 + $0x20] sm:$0xff]  ;;  %v2880_v19 = vor.u32 %v3443_v6, %v2879_v5  ;;  %v3313_v21 = vld [vmem:[#allocation6 + $0x104] sm:$0xf]  ;;  %v2740_v25 = vor.u32 %v3405_v12, %v2737_v13 }
  0x4b   :  { %1360 = vmatpush.bf16.msrb.mxu0 %v2800_v34  ;;  %v2369_v22 = vld [vmem:[#allocation6 + $0x110] sm:$0xf0]  ;;  %v3469_v26 = vld [vmem:[#allocation6 + $0x5e4] sm:$0xf]  ;;  %v2868_v29 = vor.u32 %v3437_v16, %v2865_v17  ;;  %v3804_v30 = vpack.c.bf16 %v104_v18, %v104_v18 }
  0x4c   :  { %1373 = vmatpush.bf16.msrb.mxu1 %v2928_v37  ;;  %3021 = vmatmul.msk.bf16.vlgmr.msrb.gmra.mxu2 %vm1300_vm0, %v3800_v45  ;;  %v105_v23 = vld [vmem:[#allocation2 + $0x28] sm:$0xff]  ;;  %v3369_v28 = vld [vmem:[#allocation6 + $0x2c4] sm:$0xf]  ;;  %v2372_v34 = vor.u32 %v3313_v21, %v2369_v22 }
  0x4d   :  { %1411 = vmatpush.bf16.msra.mxu2 %v2436_v33  ;;  %v2993_v27 = vld [vmem:[#allocation6 + $0x5f0] sm:$0xf0]  ;;  %v3401_v32 = vld [vmem:[#allocation6 + $0x3c4] sm:$0xf]  ;;  %v3806_v35 = vpack.c.bf16 %v105_v23, %v105_v23 }
  0x4e   :  { %1399 = vmatpush.bf16.msrb.mxu3 %v2292_v38  ;;  %v2593_v31 = vld [vmem:[#allocation6 + $0x2d0] sm:$0xf0]  ;;  %v3433_v36 = vld [vmem:[#allocation6 + $0x4c4] sm:$0xf]  ;;  %v2996_v38 = vor.u32 %v3469_v26, %v2993_v27 }
  0x4f   :  { %1361 = vmatpush.bf16.msrb.mxu0 %v2784_v47  ;;  %v2721_v33 = vld [vmem:[#allocation6 + $0x3d0] sm:$0xf0]  ;;  %v2596_v39 = vor.u32 %v3369_v28, %v2593_v31  ;;  %v3465_v41 = vld [vmem:[#allocation6 + $0x5c4] sm:$0xf] }
  0x50   :  { %1374 = vmatpush.bf16.msrb.mxu1 %v2912_v50  ;;  %v2849_v37 = vld [vmem:[#allocation6 + $0x4d0] sm:$0xf0]  ;;  %v2724_v40 = vor.u32 %v3401_v32, %v2721_v33  ;;  %v3365_v43 = vld [vmem:[#allocation6 + $0x2a4] sm:$0xf] }
  0x51   :  { %1412 = vmatpush.bf16.msra.mxu2 %v2420_v46  ;;  %v2977_v42 = vld [vmem:[#allocation6 + $0x5d0] sm:$0xf0]  ;;  %v2852_v44 = vor.u32 %v3433_v36, %v2849_v37  ;;  %v3397_v47 = vld [vmem:[#allocation6 + $0x3a4] sm:$0xf] }
  0x52   :  { %1400 = vmatpush.bf16.msrb.mxu3 %v2276_v52  ;;  %v2577_v46 = vld [vmem:[#allocation6 + $0x2b0] sm:$0xf0]  ;;  %v3429_v49 = vld [vmem:[#allocation6 + $0x4a4] sm:$0xf]  ;;  %v2980_v52 = vor.u32 %v3465_v41, %v2977_v42 }
  0x53   :  { %1362 = vmatpush.bf16.msrb.mxu0 %v2768_v62  ;;  %v2705_v48 = vld [vmem:[#allocation6 + $0x3b0] sm:$0xf0]  ;;  %v2580_v53 = vor.u32 %v3365_v43, %v2577_v46  ;;  %v3461_v56 = vld [vmem:[#allocation6 + $0x5a4] sm:$0xf] }
  0x54   :  { %1375 = vmatpush.bf16.msrb.mxu1 %v2896_v2  ;;  %v2833_v50 = vld [vmem:[#allocation6 + $0x4b0] sm:$0xf0]  ;;  %v2708_v54 = vor.u32 %v3397_v47, %v2705_v48  ;;  %v3361_v59 = vld [vmem:[#allocation6 + $0x284] sm:$0xf] }
  0x55   :  { %1413 = vmatpush.bf16.msra.mxu2 %v2404_v61  ;;  %v2961_v58 = vld [vmem:[#allocation6 + $0x5b0] sm:$0xf0]  ;;  %v2836_v60 = vor.u32 %v3429_v49, %v2833_v50  ;;  %v3393_v62 = vld [vmem:[#allocation6 + $0x384] sm:$0xf] }
  0x56   :  { %1401 = vmatpush.bf16.msrb.mxu3 %v2260_v3  ;;  %v2561_v61 = vld [vmem:[#allocation6 + $0x290] sm:$0xf0]  ;;  %v3425_v0 = vld [vmem:[#allocation6 + $0x484] sm:$0xf]  ;;  %v2964_v2 = vor.u32 %v3461_v56, %v2961_v58  ;;  %v2359_v56 = vld [vmem:[#allocation6 + $0xe8] sm:$0xf] }
  0x57   :  { %1363 = vmatpush.bf16.msrb.mxu0 %v2752_v15  ;;  %v2689_v63 = vld [vmem:[#allocation6 + $0x390] sm:$0xf0]  ;;  %v2564_v3 = vor.u32 %v3361_v59, %v2561_v61  ;;  %v3457_v5 = vld [vmem:[#allocation6 + $0x584] sm:$0xf]  ;;  %v3312_v58 = vld [vmem:[#allocation6 + $0xf4] sm:$0xf0] }
  0x58   :  { %1376 = vmatpush.bf16.msrb.mxu1 %v2880_v19  ;;  %v2817_v1 = vld [vmem:[#allocation6 + $0x490] sm:$0xf0]  ;;  %v2692_v4 = vor.u32 %v3393_v62, %v2689_v63  ;;  %v3357_v8 = vld [vmem:[#allocation6 + $0x264] sm:$0xf]  ;;  %v2615_v62 = vld [vmem:[#allocation6 + $0x2e8] sm:$0xf] }
  0x59   :  { %1414 = vmatpush.bf16.msra.mxu2 %v2388_v14  ;;  %v2945_v6 = vld [vmem:[#allocation6 + $0x590] sm:$0xf0]  ;;  %v2820_v9 = vor.u32 %v3425_v0, %v2817_v1  ;;  %v3389_v11 = vld [vmem:[#allocation6 + $0x364] sm:$0xf]  ;;  %v3376_v63 = vld [vmem:[#allocation6 + $0x2f4] sm:$0xf0] }
  0x5a   :  { %1402 = vmatpush.bf16.msrb.mxu3 %v2244_v20  ;;  %1364 = vmatmul.bf16.vlgmr.msrb.gmra.mxu0 %v3804_v30  ;;  %v2545_v10 = vld [vmem:[#allocation6 + $0x270] sm:$0xf0]  ;;  %v3421_v13 = vld [vmem:[#allocation6 + $0x464] sm:$0xf]  ;;  %v2948_v15 = vor.u32 %v3457_v5, %v2945_v6  ;;  %v2360_v5 = vor.u32 %v3312_v58, %v2359_v56  ;;  %v2743_v6 = vld [vmem:[#allocation6 + $0x3e8] sm:$0xf] }
  0x5b   :  { %1421 = vmatpush.bf16.msra.mxu0 %v2612_v24  ;;  %1377 = vmatmul.bf16.vlgmr.msrb.gmra.mxu1 %v3806_v35  ;;  %v2673_v12 = vld [vmem:[#allocation6 + $0x370] sm:$0xf0]  ;;  %v2548_v16 = vor.u32 %v3357_v8, %v2545_v10  ;;  %v3453_v18 = vld [vmem:[#allocation6 + $0x564] sm:$0xf]  ;;  %v3408_v8 = vld [vmem:[#allocation6 + $0x3f4] sm:$0xf0] }
  0x5c   :  { %1434 = vmatpush.bf16.msra.mxu1 %v2740_v25  ;;  %v2801_v14 = vld [vmem:[#allocation6 + $0x470] sm:$0xf0]  ;;  %v2676_v17 = vor.u32 %v3389_v11, %v2673_v12  ;;  %v3353_v20 = vld [vmem:[#allocation6 + $0x244] sm:$0xf]  ;;  %v2487_v10 = vld [vmem:[#allocation6 + $0x1e8] sm:$0xf]  ;;  %v2616_v12 = vor.u32 %v3376_v63, %v2615_v62 }
  0x5d   :  { %1415 = vmatpush.bf16.msra.mxu2 %v2372_v34  ;;  %1403 = vmatmul.bf16.vlgmr.msrb.gmra.mxu3 %v3790_v55  ;;  %v2929_v19 = vld [vmem:[#allocation6 + $0x570] sm:$0xf0]  ;;  %v2804_v21 = vor.u32 %v3421_v13, %v2801_v14  ;;  %v3385_v23 = vld [vmem:[#allocation6 + $0x344] sm:$0xf]  ;;  %v3344_v11 = vld [vmem:[#allocation6 + $0x1f4] sm:$0xf0] }
  0x5e   :  { %1447 = vmatpush.bf16.msra.mxu3 %v2868_v29  ;;  %v2529_v22 = vld [vmem:[#allocation6 + $0x250] sm:$0xf0]  ;;  %v3417_v25 = vld [vmem:[#allocation6 + $0x444] sm:$0xf]  ;;  %v2932_v27 = vor.u32 %v3453_v18, %v2929_v19  ;;  %v2343_v14 = vld [vmem:[#allocation6 + $0xc8] sm:$0xf]  ;;  %v2488_v19 = vor.u32 %v3344_v11, %v2487_v10 }
  0x5f   :  { %1422 = vmatpush.bf16.msra.mxu0 %v2596_v39  ;;  %v2657_v24 = vld [vmem:[#allocation6 + $0x350] sm:$0xf0]  ;;  %v2532_v28 = vor.u32 %v3353_v20, %v2529_v22  ;;  %v3449_v31 = vld [vmem:[#allocation6 + $0x544] sm:$0xf]  ;;  %v3372_v18 = vld [vmem:[#allocation6 + $0x2d4] sm:$0xf0] }
  0x60   :  { %1435 = vmatpush.bf16.msra.mxu1 %v2724_v40  ;;  %1416 = vmatmul.bf16.vlgmr.msra.gmra.mxu2 %v3796_v7  ;;  %v2785_v26 = vld [vmem:[#allocation6 + $0x450] sm:$0xf0]  ;;  %v2660_v29 = vor.u32 %v3385_v23, %v2657_v24  ;;  %v3349_v33 = vld [vmem:[#allocation6 + $0x224] sm:$0xf]  ;;  %v2727_v20 = vld [vmem:[#allocation6 + $0x3c8] sm:$0xf] }
  0x61   :  { %1460 = vmatpush.bf16.msrb.mxu2 %v2996_v38  ;;  %v2913_v32 = vld [vmem:[#allocation6 + $0x550] sm:$0xf0]  ;;  %v2788_v34 = vor.u32 %v3417_v25, %v2785_v26  ;;  %v3381_v37 = vld [vmem:[#allocation6 + $0x324] sm:$0xf]  ;;  %v2471_v23 = vld [vmem:[#allocation6 + $0x1c8] sm:$0xf] }
  0x62   :  { %1448 = vmatpush.bf16.msra.mxu3 %v2852_v44  ;;  %v2513_v36 = vld [vmem:[#allocation6 + $0x230] sm:$0xf0]  ;;  %v3413_v39 = vld [vmem:[#allocation6 + $0x424] sm:$0xf]  ;;  %v2916_v41 = vor.u32 %v3449_v31, %v2913_v32  ;;  %v3340_v24 = vld [vmem:[#allocation6 + $0x1d4] sm:$0xf0] }
  0x63   :  { %1423 = vmatpush.bf16.msra.mxu0 %v2580_v53  ;;  %v2641_v38 = vld [vmem:[#allocation6 + $0x330] sm:$0xf0]  ;;  %v3445_v42 = vld [vmem:[#allocation6 + $0x524] sm:$0xf]  ;;  %v2516_v44 = vor.u32 %v3349_v33, %v2513_v36  ;;  %v2327_v26 = vld [vmem:[#allocation6 + $0xa8] sm:$0xf]  ;;  %v2472_v32 = vor.u32 %v3340_v24, %v2471_v23 }
  0x64   :  { %1436 = vmatpush.bf16.msra.mxu1 %v2708_v54  ;;  %v2769_v40 = vld [vmem:[#allocation6 + $0x430] sm:$0xf0]  ;;  %v2644_v46 = vor.u32 %v3381_v37, %v2641_v38  ;;  %v3345_v47 = vld [vmem:[#allocation6 + $0x204] sm:$0xf]  ;;  %v3368_v31 = vld [vmem:[#allocation6 + $0x2b4] sm:$0xf0] }
  0x65   :  { %1461 = vmatpush.bf16.msrb.mxu2 %v2980_v52  ;;  %v2897_v43 = vld [vmem:[#allocation6 + $0x530] sm:$0xf0]  ;;  %v3377_v49 = vld [vmem:[#allocation6 + $0x304] sm:$0xf]  ;;  %v2772_v50 = vor.u32 %v3413_v39, %v2769_v40  ;;  %v2711_v33 = vld [vmem:[#allocation6 + $0x3a8] sm:$0xf] }
  0x66   :  { %1449 = vmatpush.bf16.msra.mxu3 %v2836_v60  ;;  %v2497_v48 = vld [vmem:[#allocation6 + $0x210] sm:$0xf0]  ;;  %v3409_v53 = vld [vmem:[#allocation6 + $0x404] sm:$0xf]  ;;  %v2900_v60 = vor.u32 %v3445_v42, %v2897_v43  ;;  %v2455_v37 = vld [vmem:[#allocation6 + $0x1a8] sm:$0xf] }
  0x67   :  { %1424 = vmatpush.bf16.msra.mxu0 %v2564_v3  ;;  %v2625_v52 = vld [vmem:[#allocation6 + $0x310] sm:$0xf0]  ;;  %v3473_v59 = vld [vmem:[#allocation6 + $0x604] sm:$0xf]  ;;  %v2500_v0 = vor.u32 %v3345_v47, %v2497_v48  ;;  %v3336_v38 = vld [vmem:[#allocation6 + $0x1b4] sm:$0xf0] }
  0x68   :  { %1437 = vmatpush.bf16.msra.mxu1 %v2692_v4  ;;  %v2753_v54 = vld [vmem:[#allocation6 + $0x410] sm:$0xf0]  ;;  %v2628_v1 = vor.u32 %v3377_v49, %v2625_v52  ;;  %v2311_v40 = vld [vmem:[#allocation6 + $0x88] sm:$0xf]  ;;  %v3396_v48 = vld [vmem:[#allocation6 + $0x394] sm:$0xf0] }
  0x69   :  { %1462 = vmatpush.bf16.msrb.mxu2 %v2964_v2  ;;  %v3009_v61 = vld [vmem:[#allocation6 + $0x610] sm:$0xf0]  ;;  %v3441_v2 = vld [vmem:[#allocation6 + $0x504] sm:$0xf]  ;;  %v2756_v4 = vor.u32 %v3409_v53, %v2753_v54  ;;  %v2567_v43 = vld [vmem:[#allocation6 + $0x288] sm:$0xf] }
  0x6a   :  { %1450 = vmatpush.bf16.msra.mxu3 %v2820_v9  ;;  %v2881_v3 = vld [vmem:[#allocation6 + $0x510] sm:$0xf0]  ;;  %v3012_v9 = vor.u32 %v3473_v59, %v3009_v61  ;;  %v2695_v47 = vld [vmem:[#allocation6 + $0x388] sm:$0xf]  ;;  %v3332_v52 = vld [vmem:[#allocation6 + $0x194] sm:$0xf0] }
  0x6b   :  { %1425 = vmatpush.bf16.msra.mxu0 %v2548_v16  ;;  %v2884_v13 = vor.u32 %v3441_v2, %v2881_v3  ;;  %v2744_v16 = vor.u32 %v3408_v8, %v2743_v6  ;;  %v2295_v54 = vld [vmem:[#allocation6 + $0x68] sm:$0xf]  ;;  %v3296_v56 = vld [vmem:[#allocation6 + $0x74] sm:$0xf0]  ;;  %v2696_v58 = vor.u32 %v3396_v48, %v2695_v47  ;;  %v3310_v47 = vld [vmem:[#allocation6 + $0xec] sm:$0xf] }
  0x6c   :  { %1438 = vmatpush.bf16.msra.mxu1 %v2676_v17  ;;  %v2599_v17 = vld [vmem:[#allocation6 + $0x2c8] sm:$0xf]  ;;  %v3392_v63 = vld [vmem:[#allocation6 + $0x374] sm:$0xf0]  ;;  %v2361_v48 = vld [vmem:[#allocation6 + $0xf8] sm:$0xf0] }
  0x6d   :  { %1463 = vmatpush.bf16.msrb.mxu2 %v2948_v15  ;;  %v3308_v15 = vld [vmem:[#allocation6 + $0xd4] sm:$0xf0]  ;;  %v2600_v25 = vor.u32 %v3372_v18, %v2599_v17  ;;  %v2551_v59 = vld [vmem:[#allocation6 + $0x268] sm:$0xf] }
  0x6e   :  { %1451 = vmatpush.bf16.msra.mxu3 %v2804_v21  ;;  %v3404_v21 = vld [vmem:[#allocation6 + $0x3d4] sm:$0xf0]  ;;  %v2344_v22 = vor.u32 %v3308_v15, %v2343_v14  ;;  %v2679_v62 = vld [vmem:[#allocation6 + $0x368] sm:$0xf] }
  0x6f   :  { %1426 = vmatpush.bf16.msra.mxu0 %v2532_v28  ;;  %v2728_v28 = vor.u32 %v3404_v21, %v2727_v20  ;;  %v3328_v2 = vld [vmem:[#allocation6 + $0x174] sm:$0xf0]  ;;  %v2680_v6 = vor.u32 %v3392_v63, %v2679_v62  ;;  %v2535_v8 = vld [vmem:[#allocation6 + $0x248] sm:$0xf]  ;;  %v2364_v63 = vor.u32 %v3310_v47, %v2361_v48 }
  0x70   :  { %1439 = vmatpush.bf16.msra.mxu1 %v2660_v29  ;;  %v2583_v29 = vld [vmem:[#allocation6 + $0x2a8] sm:$0xf]  ;;  %v3324_v15 = vld [vmem:[#allocation6 + $0x154] sm:$0xf0] }
  0x71   :  { %1464 = vmatpush.bf16.msrb.mxu2 %v2932_v27  ;;  %v3304_v27 = vld [vmem:[#allocation6 + $0xb4] sm:$0xf0]  ;;  %v2584_v39 = vor.u32 %v3368_v31, %v2583_v29  ;;  %v2663_v11 = vld [vmem:[#allocation6 + $0x348] sm:$0xf] }
  0x72   :  { %1452 = vmatpush.bf16.msra.mxu3 %v2788_v34  ;;  %v3400_v34 = vld [vmem:[#allocation6 + $0x3b4] sm:$0xf0]  ;;  %v2328_v36 = vor.u32 %v3304_v27, %v2327_v26  ;;  %v2407_v14 = vld [vmem:[#allocation6 + $0x148] sm:$0xf] }
  0x73   :  { %1427 = vmatpush.bf16.msra.mxu0 %v2516_v44  ;;  %v2712_v42 = vor.u32 %v3400_v34, %v2711_v33  ;;  %v3364_v44 = vld [vmem:[#allocation6 + $0x294] sm:$0xf0]  ;;  %v2263_v17 = vld [vmem:[#allocation6 + $0x28] sm:$0xf] }
  0x74   :  { %1440 = vmatpush.bf16.msra.mxu1 %v2644_v46  ;;  %v2456_v46 = vor.u32 %v3336_v38, %v2455_v37  ;;  %v2568_v53 = vor.u32 %v3364_v44, %v2567_v43  ;;  %v3288_v18 = vld [vmem:[#allocation6 + $0x34] sm:$0xf0]  ;;  %v2519_v20 = vld [vmem:[#allocation6 + $0x228] sm:$0xf] }
  0x75   :  { %1465 = vmatpush.bf16.msrb.mxu2 %v2916_v41  ;;  %v3300_v41 = vld [vmem:[#allocation6 + $0x94] sm:$0xf0]  ;;  %v2647_v23 = vld [vmem:[#allocation6 + $0x328] sm:$0xf] }
  0x76   :  { %1453 = vmatpush.bf16.msra.mxu3 %v2772_v50  ;;  %v2312_v49 = vor.u32 %v3300_v41, %v2311_v40  ;;  %v2439_v50 = vld [vmem:[#allocation6 + $0x188] sm:$0xf]  ;;  %v3352_v21 = vld [vmem:[#allocation6 + $0x234] sm:$0xf0] }
  0x77   :  { %1428 = vmatpush.bf16.msra.mxu0 %v2500_v0  ;;  %v2440_v61 = vor.u32 %v3332_v52, %v2439_v50  ;;  %v2296_v0 = vor.u32 %v3296_v56, %v2295_v54  ;;  %v3384_v24 = vld [vmem:[#allocation6 + $0x334] sm:$0xf0]  ;;  %v2391_v26 = vld [vmem:[#allocation6 + $0x128] sm:$0xf]  ;;  %v2520_v29 = vor.u32 %v3352_v21, %v2519_v20 }
  0x78   :  { %1441 = vmatpush.bf16.msra.mxu1 %v2628_v1  ;;  %v2423_v1 = vld [vmem:[#allocation6 + $0x168] sm:$0xf]  ;;  %v3320_v27 = vld [vmem:[#allocation6 + $0x134] sm:$0xf0]  ;;  %v2648_v34 = vor.u32 %v3384_v24, %v2647_v23  ;;  %v2457_v23 = vld [vmem:[#allocation6 + $0x1b8] sm:$0xf0] }
  0x79   :  { %1466 = vmatpush.bf16.msrb.mxu2 %v2900_v60  ;;  %v3360_v60 = vld [vmem:[#allocation6 + $0x274] sm:$0xf0]  ;;  %v2424_v10 = vor.u32 %v3328_v2, %v2423_v1  ;;  %v2503_v37 = vld [vmem:[#allocation6 + $0x208] sm:$0xf]  ;;  %v2392_v40 = vor.u32 %v3320_v27, %v2391_v26  ;;  %v3306_v1 = vld [vmem:[#allocation6 + $0xcc] sm:$0xf] }
  0x7a   :  { %1454 = vmatpush.bf16.msra.mxu3 %v2756_v4  ;;  %1429 = vmatmul.bf16.vlgmr.msra.gmra.mxu0 %v3788_v51  ;;  %v2552_v3 = vor.u32 %v3360_v60, %v2551_v59  ;;  %v2279_v4 = vld [vmem:[#allocation6 + $0x48] sm:$0xf]  ;;  %v3284_v31 = vld [vmem:[#allocation6 + $0x14] sm:$0xf0]  ;;  %v3342_v60 = vld [vmem:[#allocation6 + $0x1ec] sm:$0xf] }
  0x7b   :  { %1512 = vmatpush.bf16.msrb.mxu0 %v2616_v12  ;;  %1442 = vmatmul.bf16.vlgmr.msra.gmra.mxu1 %v3792_v57  ;;  %v3388_v12 = vld [vmem:[#allocation6 + $0x354] sm:$0xf0]  ;;  %v2999_v52 = vld [vmem:[#allocation6 + $0x5e8] sm:$0xf]  ;;  %v2345_v2 = vld [vmem:[#allocation6 + $0xd8] sm:$0xf0] }
  0x7c   :  { %1486 = vmatpush.bf16.msrb.mxu1 %v2360_v5  ;;  %v3292_v5 = vld [vmem:[#allocation6 + $0x54] sm:$0xf0]  ;;  %v2855_v54 = vld [vmem:[#allocation6 + $0x4c8] sm:$0xf]  ;;  %v3298_v26 = vld [vmem:[#allocation6 + $0x8c] sm:$0xf] }
  0x7d   :  { %1467 = vmatpush.bf16.msrb.mxu2 %v2884_v13  ;;  %1455 = vmatmul.bf16.vlgmr.msra.gmra.mxu3 %v3804_v30  ;;  %v2280_v13 = vor.u32 %v3292_v5, %v2279_v4  ;;  %v3440_v33 = vld [vmem:[#allocation6 + $0x4f4] sm:$0xf0]  ;;  %v2983_v5 = vld [vmem:[#allocation6 + $0x5c8] sm:$0xf]  ;;  %v2313_v27 = vld [vmem:[#allocation6 + $0x98] sm:$0xf0] }
  0x7e   :  { %1480 = vmatpush.bf16.msrb.mxu3 %v3012_v9  ;;  %v3356_v9 = vld [vmem:[#allocation6 + $0x254] sm:$0xf0]  ;;  %v2823_v20 = vld [vmem:[#allocation6 + $0x488] sm:$0xf] }
  0x7f   :  { %1513 = vmatpush.bf16.msrb.mxu0 %v2600_v25  ;;  %v2264_v25 = vor.u32 %v3288_v18, %v2263_v17  ;;  %v3348_v38 = vld [vmem:[#allocation6 + $0x214] sm:$0xf0]  ;;  %v2967_v18 = vld [vmem:[#allocation6 + $0x5a8] sm:$0xf] }
  0x80   :  { %1487 = vmatpush.bf16.msrb.mxu1 %v2344_v22  ;;  %1468 = vmatmul.bf16.vlgmr.msrb.gmra.mxu2 %v3806_v35  ;;  %v2408_v22 = vor.u32 %v3324_v15, %v2407_v14  ;;  %v3380_v41 = vld [vmem:[#allocation6 + $0x314] sm:$0xf0]  ;;  %v2504_v50 = vor.u32 %v3348_v38, %v2503_v37  ;;  %v3302_v14 = vld [vmem:[#allocation6 + $0xac] sm:$0xf]  ;;  %v2329_v15 = vld [vmem:[#allocation6 + $0xb8] sm:$0xf0]  ;;  %v2316_v38 = vor.u32 %v3298_v26, %v2313_v27 }
  0x81   :  { %1525 = vmatpush.bf16.msra.mxu2 %v2744_v16  ;;  %v2536_v16 = vor.u32 %v3356_v9, %v2535_v8  ;;  %v3476_v43 = vld [vmem:[#allocation6 + $0x614] sm:$0xf0]  ;;  %v2839_v8 = vld [vmem:[#allocation6 + $0x4a8] sm:$0xf]  ;;  %v2332_v24 = vor.u32 %v3302_v14, %v2329_v15  ;;  %v2441_v37 = vld [vmem:[#allocation6 + $0x198] sm:$0xf0] }
  0x82   :  { %1499 = vmatpush.bf16.msra.mxu3 %v2488_v19  ;;  %v2664_v19 = vor.u32 %v3388_v12, %v2663_v11  ;;  %v3432_v9 = vld [vmem:[#allocation6 + $0x4b4] sm:$0xf0]  ;;  %v2473_v11 = vld [vmem:[#allocation6 + $0x1d8] sm:$0xf0]  ;;  %v2348_v12 = vor.u32 %v3306_v1, %v2345_v2  ;;  %v2791_v47 = vld [vmem:[#allocation6 + $0x448] sm:$0xf] }
  0x83   :  { %1514 = vmatpush.bf16.msrb.mxu0 %v2584_v39  ;;  %v2631_v39 = vld [vmem:[#allocation6 + $0x308] sm:$0xf]  ;;  %v3428_v21 = vld [vmem:[#allocation6 + $0x494] sm:$0xf0]  ;;  %v2409_v1 = vld [vmem:[#allocation6 + $0x158] sm:$0xf0] }
  0x84   :  { %1488 = vmatpush.bf16.msrb.mxu1 %v2328_v36  ;;  %v2375_v36 = vld [vmem:[#allocation6 + $0x108] sm:$0xf]  ;;  %v2632_v56 = vor.u32 %v3380_v41, %v2631_v39  ;;  %v2297_v41 = vld [vmem:[#allocation6 + $0x78] sm:$0xf0]  ;;  %v3420_v48 = vld [vmem:[#allocation6 + $0x454] sm:$0xf0] }
  0x85   :  { %1526 = vmatpush.bf16.msra.mxu2 %v2728_v28  ;;  %v2247_v28 = vld [vmem:[#allocation6 + $0x8] sm:$0xf]  ;;  %v2393_v14 = vld [vmem:[#allocation6 + $0x138] sm:$0xf0] }
  0x86   :  { %1500 = vmatpush.bf16.msra.mxu3 %v2472_v32  ;;  %v2871_v32 = vld [vmem:[#allocation6 + $0x4e8] sm:$0xf]  ;;  %v2248_v44 = vor.u32 %v3284_v31, %v2247_v28  ;;  %v2824_v28 = vor.u32 %v3428_v21, %v2823_v20  ;;  %v3282_v20 = vld [vmem:[#allocation6 + $0xc] sm:$0xf]  ;;  %v2249_v21 = vld [vmem:[#allocation6 + $0x18] sm:$0xf0] }
  0x87   :  { %1515 = vmatpush.bf16.msrb.mxu0 %v2568_v53  ;;  %v3472_v53 = vld [vmem:[#allocation6 + $0x5f4] sm:$0xf0]  ;;  %v2951_v31 = vld [vmem:[#allocation6 + $0x588] sm:$0xf]  ;;  %v2745_v26 = vld [vmem:[#allocation6 + $0x3f8] sm:$0xf0] }
  0x88   :  { %1489 = vmatpush.bf16.msrb.mxu1 %v2312_v49  ;;  %v2872_v49 = vor.u32 %v3440_v33, %v2871_v32  ;;  %v3460_v32 = vld [vmem:[#allocation6 + $0x594] sm:$0xf0]  ;;  %v2807_v33 = vld [vmem:[#allocation6 + $0x468] sm:$0xf] }
  0x89   :  { %1527 = vmatpush.bf16.msra.mxu2 %v2712_v42  ;;  %v3015_v42 = vld [vmem:[#allocation6 + $0x608] sm:$0xf]  ;;  %v2952_v39 = vor.u32 %v3460_v32, %v2951_v31  ;;  %v3370_v31 = vld [vmem:[#allocation6 + $0x2cc] sm:$0xf]  ;;  %v2252_v32 = vor.u32 %v3282_v20, %v2249_v21 }
  0x8a   :  { %1501 = vmatpush.bf16.msra.mxu3 %v2456_v46  ;;  %v3316_v46 = vld [vmem:[#allocation6 + $0x114] sm:$0xf0]  ;;  %v3016_v59 = vor.u32 %v3476_v43, %v3015_v42  ;;  %v3390_v20 = vld [vmem:[#allocation6 + $0x36c] sm:$0xf] }
  0x8b   :  { %1516 = vmatpush.bf16.msrb.mxu0 %v2552_v3  ;;  %v2376_v62 = vor.u32 %v3316_v46, %v2375_v36  ;;  %v3330_v36 = vld [vmem:[#allocation6 + $0x18c] sm:$0xf]  ;;  %v3456_v46 = vld [vmem:[#allocation6 + $0x574] sm:$0xf0] }
  0x8c   :  { %1490 = vmatpush.bf16.msrb.mxu1 %v2296_v0  ;;  %v3000_v0 = vor.u32 %v3472_v53, %v2999_v52  ;;  %v2444_v43 = vor.u32 %v3330_v36, %v2441_v37  ;;  %v2377_v36 = vld [vmem:[#allocation6 + $0x118] sm:$0xf0] }
  0x8d   :  { %1528 = vmatpush.bf16.msra.mxu2 %v2696_v58  ;;  %3022 = vmatmul.msk.bf16.vlgmr.msrb.gmra.mxu3 %vm1300_vm0, %v3800_v45  ;;  %v3436_v58 = vld [vmem:[#allocation6 + $0x4d4] sm:$0xf0] }
  0x8e   :  { %1502 = vmatpush.bf16.msra.mxu3 %v2440_v61  ;;  %v2489_v61 = vld [vmem:[#allocation6 + $0x1f8] sm:$0xf0]  ;;  %v2856_v3 = vor.u32 %v3436_v58, %v2855_v54  ;;  %v3290_v54 = vld [vmem:[#allocation6 + $0x4c] sm:$0xf]  ;;  %v2792_v58 = vor.u32 %v3420_v48, %v2791_v47 }
  0x8f   :  { %1517 = vmatpush.bf16.msrb.mxu0 %v2536_v16  ;;  %v2492_v4 = vor.u32 %v3342_v60, %v2489_v61  ;;  %v2840_v16 = vor.u32 %v3432_v9, %v2839_v8  ;;  %v2919_v60 = vld [vmem:[#allocation6 + $0x548] sm:$0xf]  ;;  %v3452_v61 = vld [vmem:[#allocation6 + $0x554] sm:$0xf0]  ;;  %v3434_v47 = vld [vmem:[#allocation6 + $0x4cc] sm:$0xf] }
  0x90   :  { %1491 = vmatpush.bf16.msrb.mxu1 %v2280_v13  ;;  %v2903_v9 = vld [vmem:[#allocation6 + $0x528] sm:$0xf]  ;;  %v2857_v48 = vld [vmem:[#allocation6 + $0x4d8] sm:$0xf0] }
  0x91   :  { %1529 = vmatpush.bf16.msra.mxu2 %v2680_v6  ;;  %v3468_v6 = vld [vmem:[#allocation6 + $0x5d4] sm:$0xf0] }
  0x92   :  { %1503 = vmatpush.bf16.msra.mxu3 %v2424_v10  ;;  %v3338_v10 = vld [vmem:[#allocation6 + $0x1cc] sm:$0xf]  ;;  %v2984_v13 = vor.u32 %v3468_v6, %v2983_v5  ;;  %v2265_v5 = vld [vmem:[#allocation6 + $0x38] sm:$0xf0] }
  0x93   :  { %1518 = vmatpush.bf16.msrb.mxu0 %v2520_v29  ;;  %v2476_v17 = vor.u32 %v3338_v10, %v2473_v11  ;;  %v3448_v10 = vld [vmem:[#allocation6 + $0x534] sm:$0xf0]  ;;  %v2759_v11 = vld [vmem:[#allocation6 + $0x408] sm:$0xf] }
  0x94   :  { %1492 = vmatpush.bf16.msrb.mxu1 %v2264_v25 }
  0x95   :  { %1530 = vmatpush.bf16.msra.mxu2 %v2664_v19  ;;  %v3464_v19 = vld [vmem:[#allocation6 + $0x5b4] sm:$0xf0] }
  0x96   :  { %1504 = vmatpush.bf16.msra.mxu3 %v2408_v22  ;;  %v3334_v22 = vld [vmem:[#allocation6 + $0x1ac] sm:$0xf]  ;;  %v2968_v25 = vor.u32 %v3464_v19, %v2967_v18  ;;  %v2904_v18 = vor.u32 %v3448_v10, %v2903_v9  ;;  %v2887_v19 = vld [vmem:[#allocation6 + $0x508] sm:$0xf]  ;;  %v2697_v10 = vld [vmem:[#allocation6 + $0x398] sm:$0xf0] }
  0x97   :  { %1519 = vmatpush.bf16.msrb.mxu0 %v2504_v50  ;;  %v2460_v29 = vor.u32 %v3334_v22, %v2457_v23  ;;  %v2425_v50 = vld [vmem:[#allocation6 + $0x178] sm:$0xf0] }
  0x98   :  { %1493 = vmatpush.bf16.msrb.mxu1 %v2248_v44  ;;  %v2935_v44 = vld [vmem:[#allocation6 + $0x568] sm:$0xf] }
  0x99   :  { %1531 = vmatpush.bf16.msra.mxu2 %v2648_v34  ;;  %v3424_v34 = vld [vmem:[#allocation6 + $0x474] sm:$0xf0]  ;;  %v2936_v53 = vor.u32 %v3456_v46, %v2935_v44  ;;  %v2729_v46 = vld [vmem:[#allocation6 + $0x3d8] sm:$0xf0] }
  0x9a   :  { %1505 = vmatpush.bf16.msra.mxu3 %v2392_v40  ;;  %1520 = vmatmul.bf16.vlgmr.msrb.gmra.mxu0 %v3788_v51  ;;  %v3294_v40 = vld [vmem:[#allocation6 + $0x6c] sm:$0xf]  ;;  %v2808_v42 = vor.u32 %v3424_v34, %v2807_v33  ;;  %v2601_v33 = vld [vmem:[#allocation6 + $0x2d8] sm:$0xf0] }
  0x9b   :  { %1571 = vmatpush.bf16.msra.mxu0 %v3016_v59  ;;  %1494 = vmatmul.bf16.vlgmr.msrb.gmra.mxu1 %v3790_v55  ;;  %v2300_v52 = vor.u32 %v3294_v40, %v2297_v41  ;;  %v3314_v34 = vld [vmem:[#allocation6 + $0x10c] sm:$0xf] }
  0x9c   :  { %1538 = vmatpush.bf16.msra.mxu1 %v2872_v49  ;;  %v3326_v49 = vld [vmem:[#allocation6 + $0x16c] sm:$0xf]  ;;  %v2380_v44 = vor.u32 %v3314_v34, %v2377_v36 }
  0x9d   :  { %1532 = vmatpush.bf16.msra.mxu2 %v2632_v56  ;;  %v2281_v56 = vld [vmem:[#allocation6 + $0x58] sm:$0xf0]  ;;  %v2428_v59 = vor.u32 %v3326_v49, %v2425_v50  ;;  %v3366_v50 = vld [vmem:[#allocation6 + $0x2ac] sm:$0xf] }
  0x9e   :  { %1506 = vmatpush.bf16.msra.mxu3 %v2376_v62  ;;  %v2775_v62 = vld [vmem:[#allocation6 + $0x428] sm:$0xf]  ;;  %v2284_v2 = vor.u32 %v3290_v54, %v2281_v56  ;;  %v2985_v54 = vld [vmem:[#allocation6 + $0x5d8] sm:$0xf0]  ;;  %v3386_v34 = vld [vmem:[#allocation6 + $0x34c] sm:$0xf] }
  0x9f   :  { %1590 = vmatpush.bf16.msrb.mxu0 %v2492_v4  ;;  %v3286_v4 = vld [vmem:[#allocation6 + $0x2c] sm:$0xf] }
  0xa0   :  { %1539 = vmatpush.bf16.msra.mxu1 %v2856_v3  ;;  %1533 = vmatmul.bf16.vlgmr.msra.gmra.mxu2 %v3792_v57  ;;  %v2920_v3 = vor.u32 %v3452_v61, %v2919_v60  ;;  %v2268_v15 = vor.u32 %v3286_v4, %v2265_v5  ;;  %v2713_v61 = vld [vmem:[#allocation6 + $0x3b8] sm:$0xf0] }
  0xa1   :  { %1577 = vmatpush.bf16.msrb.mxu2 %v2364_v63  ;;  %1507 = vmatmul.bf16.vlgmr.msra.gmra.mxu3 %v3796_v7  ;;  %v3416_v63 = vld [vmem:[#allocation6 + $0x434] sm:$0xf0]  ;;  %v2969_v4 = vld [vmem:[#allocation6 + $0x5b8] sm:$0xf0] }
  0xa2   :  { %1551 = vmatpush.bf16.msrb.mxu3 %v3000_v0  ;;  %v3322_v0 = vld [vmem:[#allocation6 + $0x14c] sm:$0xf]  ;;  %v2776_v6 = vor.u32 %v3416_v63, %v2775_v62  ;;  %v2841_v63 = vld [vmem:[#allocation6 + $0x4b8] sm:$0xf0] }
  0xa3   :  { %1591 = vmatpush.bf16.msrb.mxu0 %v2476_v17  ;;  %v2412_v8 = vor.u32 %v3322_v0, %v2409_v1  ;;  %v2617_v17 = vld [vmem:[#allocation6 + $0x2f8] sm:$0xf0]  ;;  %v3430_v62 = vld [vmem:[#allocation6 + $0x4ac] sm:$0xf] }
  0xa4   :  { %1540 = vmatpush.bf16.msra.mxu1 %v2840_v16  ;;  %v3374_v16 = vld [vmem:[#allocation6 + $0x2ec] sm:$0xf] }
  0xa5   :  { %1578 = vmatpush.bf16.msrb.mxu2 %v2348_v12  ;;  %v3412_v12 = vld [vmem:[#allocation6 + $0x414] sm:$0xf0]  ;;  %v2620_v27 = vor.u32 %v3374_v16, %v2617_v17  ;;  %v3362_v1 = vld [vmem:[#allocation6 + $0x28c] sm:$0xf]  ;;  %v2953_v17 = vld [vmem:[#allocation6 + $0x598] sm:$0xf0] }
  0xa6   :  { %1552 = vmatpush.bf16.msrb.mxu3 %v2984_v13  ;;  %v3318_v13 = vld [vmem:[#allocation6 + $0x12c] sm:$0xf]  ;;  %v2760_v22 = vor.u32 %v3412_v12, %v2759_v11  ;;  %v2825_v12 = vld [vmem:[#allocation6 + $0x498] sm:$0xf0] }
  0xa7   :  { %1592 = vmatpush.bf16.msrb.mxu0 %v2460_v29  ;;  %v2396_v23 = vor.u32 %v3318_v13, %v2393_v14  ;;  %v2873_v29 = vld [vmem:[#allocation6 + $0x4f8] sm:$0xf0]  ;;  %v3426_v11 = vld [vmem:[#allocation6 + $0x48c] sm:$0xf] }
  0xa8   :  { %1541 = vmatpush.bf16.msra.mxu1 %v2824_v28  ;;  %v3438_v28 = vld [vmem:[#allocation6 + $0x4ec] sm:$0xf] }
  0xa9   :  { %1579 = vmatpush.bf16.msrb.mxu2 %v2332_v24  ;;  %v3444_v24 = vld [vmem:[#allocation6 + $0x514] sm:$0xf0]  ;;  %v2876_v41 = vor.u32 %v3438_v28, %v2873_v29  ;;  %v3358_v14 = vld [vmem:[#allocation6 + $0x26c] sm:$0xf]  ;;  %v2937_v29 = vld [vmem:[#allocation6 + $0x578] sm:$0xf0] }
  0xaa   :  { %1553 = vmatpush.bf16.msrb.mxu3 %v2968_v25  ;;  %3023 = vmatmul.msk.bf16.vlgmr.msra.gmra.mxu0 %vm1300_vm0, %v3800_v45  ;;  %v3406_v25 = vld [vmem:[#allocation6 + $0x3ec] sm:$0xf]  ;;  %v2888_v37 = vor.u32 %v3444_v24, %v2887_v19  ;;  %v2828_v19 = vor.u32 %v3426_v11, %v2825_v12  ;;  %v2809_v24 = vld [vmem:[#allocation6 + $0x478] sm:$0xf0] }
  0xab   :  { %1593 = vmatpush.bf16.msrb.mxu0 %v2444_v43  ;;  %v2748_v40 = vor.u32 %v3406_v25, %v2745_v26  ;;  %v2604_v43 = vor.u32 %v3370_v31, %v2601_v33  ;;  %v3354_v26 = vld [vmem:[#allocation6 + $0x24c] sm:$0xf]  ;;  %v2761_v11 = vld [vmem:[#allocation6 + $0x418] sm:$0xf0] }
  0xac   :  { %1542 = vmatpush.bf16.msra.mxu1 %v2808_v42  ;;  %v3402_v42 = vld [vmem:[#allocation6 + $0x3cc] sm:$0xf] }
  0xad   :  { %1580 = vmatpush.bf16.msrb.mxu2 %v2316_v38  ;;  %v3470_v38 = vld [vmem:[#allocation6 + $0x5ec] sm:$0xf]  ;;  %v2732_v56 = vor.u32 %v3402_v42, %v2729_v46 }
  0xae   :  { %1554 = vmatpush.bf16.msrb.mxu3 %v2952_v39  ;;  %v3001_v39 = vld [vmem:[#allocation6 + $0x5f8] sm:$0xf0]  ;;  %v3454_v28 = vld [vmem:[#allocation6 + $0x56c] sm:$0xf] }
  0xaf   :  { %1594 = vmatpush.bf16.msrb.mxu0 %v2428_v59  ;;  %v3004_v49 = vor.u32 %v3470_v38, %v3001_v39  ;;  %v3398_v59 = vld [vmem:[#allocation6 + $0x3ac] sm:$0xf]  ;;  %v2665_v38 = vld [vmem:[#allocation6 + $0x358] sm:$0xf0] }
  0xb0   :  { %1543 = vmatpush.bf16.msra.mxu1 %v2792_v58  ;;  %v2860_v58 = vor.u32 %v3434_v47, %v2857_v48  ;;  %v2716_v5 = vor.u32 %v3398_v59, %v2713_v61  ;;  %v3418_v39 = vld [vmem:[#allocation6 + $0x44c] sm:$0xf]  ;;  %v2921_v47 = vld [vmem:[#allocation6 + $0x558] sm:$0xf0]  ;;  %v2668_v48 = vor.u32 %v3386_v34, %v2665_v38  ;;  %v3067_v38 = vld [vmem:[#allocation9 + $0x50] sm:$0xf] }
  0xb1   :  { %1581 = vmatpush.bf16.msrb.mxu2 %v2300_v52  ;;  %v2585_v52 = vld [vmem:[#allocation6 + $0x2b8] sm:$0xf0]  ;;  %v3350_v42 = vld [vmem:[#allocation6 + $0x22c] sm:$0xf] }
  0xb2   :  { %1555 = vmatpush.bf16.msrb.mxu3 %v2936_v53  ;;  %v3466_v53 = vld [vmem:[#allocation6 + $0x5cc] sm:$0xf]  ;;  %v2588_v60 = vor.u32 %v3366_v50, %v2585_v52 }
  0xb3   :  { %1595 = vmatpush.bf16.msrb.mxu0 %v2412_v8  ;;  %v2988_v0 = vor.u32 %v3466_v53, %v2985_v54  ;;  %v3394_v8 = vld [vmem:[#allocation6 + $0x38c] sm:$0xf]  ;;  %v2649_v53 = vld [vmem:[#allocation6 + $0x338] sm:$0xf0] }
  0xb4   :  { %1544 = vmatpush.bf16.msra.mxu1 %v2776_v6  ;;  %v2844_v6 = vor.u32 %v3430_v62, %v2841_v63  ;;  %v3450_v46 = vld [vmem:[#allocation6 + $0x54c] sm:$0xf]  ;;  %v2905_v63 = vld [vmem:[#allocation6 + $0x538] sm:$0xf0] }
  0xb5   :  { %1582 = vmatpush.bf16.msrb.mxu2 %v2284_v2  ;;  %v2569_v2 = vld [vmem:[#allocation6 + $0x298] sm:$0xf0]  ;;  %v3382_v50 = vld [vmem:[#allocation6 + $0x32c] sm:$0xf] }
  0xb6   :  { %1556 = vmatpush.bf16.msrb.mxu3 %v2920_v3  ;;  %v3462_v3 = vld [vmem:[#allocation6 + $0x5ac] sm:$0xf]  ;;  %v2572_v9 = vor.u32 %v3362_v1, %v2569_v2  ;;  %v3017_v1 = vld [vmem:[#allocation6 + $0x618] sm:$0xf0]  ;;  %v3836_v2 = vld [vmem:[#allocation8] sm:$0xf] }
  0xb7   :  { %1596 = vmatpush.bf16.msrb.mxu0 %v2396_v23  ;;  %v2972_v13 = vor.u32 %v3462_v3, %v2969_v4  ;;  %v3828_v16 = vpop.f32.mrf.mxu0  ;;  %v3422_v23 = vld [vmem:[#allocation6 + $0x46c] sm:$0xf]  ;;  %v2652_v4 = vor.u32 %v3382_v50, %v2649_v53 }
  0xb8   :  { %1545 = vmatpush.bf16.msra.mxu1 %v2760_v22  ;;  %v2681_v22 = vld [vmem:[#allocation6 + $0x378] sm:$0xf0]  ;;  %v2812_v33 = vor.u32 %v3422_v23, %v2809_v24  ;;  %v3414_v54 = vld [vmem:[#allocation6 + $0x42c] sm:$0xf] }
  0xb9   :  { %1583 = vmatpush.bf16.msrb.mxu2 %v2268_v15  ;;  %v2553_v15 = vld [vmem:[#allocation6 + $0x278] sm:$0xf0]  ;;  %v3346_v59 = vld [vmem:[#allocation6 + $0x20c] sm:$0xf] }
  0xba   :  { %1557 = vmatpush.bf16.msrb.mxu3 %v2904_v18  ;;  %v2700_v18 = vor.u32 %v3394_v8, %v2697_v10  ;;  %v2556_v21 = vor.u32 %v3358_v14, %v2553_v15  ;;  %v3446_v61 = vld [vmem:[#allocation6 + $0x52c] sm:$0xf]  ;;  %v3083_v15 = vld [vmem:[#allocation9 + $0x70] sm:$0xf] }
  0xbb   :  { %1546 = vmatmul.bf16.vlgmr.msra.gmra.mxu1 %v3804_v30  ;;  %1597 = vmatpush.bf16.msrb.mxu0 %v2380_v44  ;;  %v3410_v10 = vld [vmem:[#allocation6 + $0x40c] sm:$0xf] }
  0xbc   :  { %1603 = vmatpush.bf16.msrb.mxu1 %v2620_v27  ;;  %v2537_v27 = vld [vmem:[#allocation6 + $0x258] sm:$0xf0]  ;;  %v2764_v23 = vor.u32 %v3410_v10, %v2761_v11  ;;  %v3099_v11 = vld [vmem:[#allocation9 + $0x90] sm:$0xf] }
  0xbd   :  { %1584 = vmatpush.bf16.msrb.mxu2 %v2252_v32  ;;  %v2684_v32 = vor.u32 %v3390_v20, %v2681_v22  ;;  %v2540_v36 = vor.u32 %v3354_v26, %v2537_v27  ;;  %v3508_v20 = vld [vmem:[#allocation9 + $0xf4] sm:$0xf0]  ;;  %v3075_v26 = vld [vmem:[#allocation9 + $0x60] sm:$0xf]  ;;  %v3490_v27 = vld [vmem:[#allocation9 + $0x64] sm:$0xf0] }
  0xbe   :  { %1558 = vmatpush.bf16.msrb.mxu3 %v2888_v37  ;;  %1598 = vmatmul.bf16.vlgmr.msrb.gmra.mxu0 %v3796_v7  ;;  %v3830_v25 = vpop.f32.mrf.mxu1 }
  0xbf   :  { %1642 = vmatpush.bf16.msra.mxu0 %v3004_v49  ;;  %v3832_v31 = vpop.f32.mrf.mxu2  ;;  %v1315_v44 = vpop.f32.mrf.mxu0 }
  0xc0   :  { %1604 = vmatpush.bf16.msrb.mxu1 %v2604_v43  ;;  %1585 = vmatmul.bf16.vlgmr.msrb.gmra.mxu2 %v3790_v55  ;;  %v3458_v55 = vld [vmem:[#allocation6 + $0x58c] sm:$0xf]  ;;  %v2521_v43 = vld [vmem:[#allocation6 + $0x238] sm:$0xf0] }
  0xc1   :  { %1629 = vmatpush.bf16.msra.mxu2 %v2876_v41  ;;  %1559 = vmatmul.bf16.vlgmr.msrb.gmra.mxu3 %v3806_v35  ;;  %v2956_v7 = vor.u32 %v3458_v55, %v2953_v17  ;;  %v2940_v41 = vor.u32 %v3454_v28, %v2937_v29  ;;  %v2524_v52 = vor.u32 %v3350_v42, %v2521_v43  ;;  %v3492_v55 = vld [vmem:[#allocation9 + $0x74] sm:$0xf0]  ;;  %v3442_v17 = vld [vmem:[#allocation6 + $0x50c] sm:$0xf]  ;;  %v3139_v29 = vld [vmem:[#allocation9 + $0xe0] sm:$0xf] }
  0xc2   :  { %1616 = vmatpush.bf16.msra.mxu3 %v2748_v40  ;;  %v3834_v37 = vpop.f32.mrf.mxu3  ;;  %v2793_v40 = vld [vmem:[#allocation6 + $0x458] sm:$0xf0]  ;;  %v3084_v24 = vor.u32 %v3492_v55, %v3083_v15  ;;  %v3486_v44 = vld [vmem:[#allocation9 + $0x44] sm:$0xf0]  ;;  %v3027_v15 = vld [vmem:[#allocation9] sm:$0xf] }
  0xc3   :  { %1643 = vmatpush.bf16.msra.mxu0 %v2988_v0  ;;  %v2796_v49 = vor.u32 %v3418_v39, %v2793_v40  ;;  %v3474_v0 = vld [vmem:[#allocation6 + $0x60c] sm:$0xf]  ;;  %v3488_v39 = vld [vmem:[#allocation9 + $0x54] sm:$0xf0] }
  0xc4   :  { %1605 = vmatpush.bf16.msrb.mxu1 %v2588_v60  ;;  %v2505_v60 = vld [vmem:[#allocation6 + $0x218] sm:$0xf0]  ;;  %v3020_v14 = vor.u32 %v3474_v0, %v3017_v1  ;;  %v3107_v1 = vld [vmem:[#allocation9 + $0xa0] sm:$0xf]  ;;  %v3478_v55 = vld [vmem:[#allocation9 + $0x4] sm:$0xf0] }
  0xc5   :  { %1630 = vmatpush.bf16.msra.mxu2 %v2860_v58  ;;  %v2924_v58 = vor.u32 %v3450_v46, %v2921_v47  ;;  %v2508_v8 = vor.u32 %v3346_v59, %v2505_v60  ;;  %v3504_v42 = vld [vmem:[#allocation9 + $0xd4] sm:$0xf0] }
  0xc6   :  { %1617 = vmatpush.bf16.msra.mxu3 %v2732_v56  ;;  %v2777_v56 = vld [vmem:[#allocation6 + $0x438] sm:$0xf0]  ;;  %v1328_v62 = vpop.f32.mrf.mxu1 }
  0xc7   :  { %1644 = vmatpush.bf16.msra.mxu0 %v2972_v13  ;;  %v1341_v3 = vpop.f32.mrf.mxu2  ;;  %v2908_v13 = vor.u32 %v3446_v61, %v2905_v63  ;;  %v3043_v61 = vld [vmem:[#allocation9 + $0x20] sm:$0xf]  ;;  %v3482_v62 = vld [vmem:[#allocation9 + $0x24] sm:$0xf0] }
  0xc8   :  { %1606 = vmatpush.bf16.msrb.mxu1 %v2572_v9  ;;  %v2633_v9 = vld [vmem:[#allocation6 + $0x318] sm:$0xf0]  ;;  %v3498_v3 = vld [vmem:[#allocation9 + $0xa4] sm:$0xf0] }
  0xc9   :  { %1631 = vmatpush.bf16.msra.mxu2 %v2844_v6  ;;  %v3378_v6 = vld [vmem:[#allocation6 + $0x30c] sm:$0xf]  ;;  %v3108_v10 = vor.u32 %v3498_v3, %v3107_v1  ;;  %v3481_v3 = vld [vmem:[#allocation9 + $0x24] sm:$0xf] }
  0xca   :  { %1618 = vmatpush.bf16.msra.mxu3 %v2716_v5  ;;  %v2780_v5 = vor.u32 %v3414_v54, %v2777_v56  ;;  %v1354_v12 = vpop.f32.mrf.mxu3  ;;  %v2636_v22 = vor.u32 %v3378_v6, %v2633_v9  ;;  %v3484_v54 = vld [vmem:[#allocation9 + $0x34] sm:$0xf0]  ;;  %v3115_v56 = vld [vmem:[#allocation9 + $0xb0] sm:$0xf] }
  0xcb   :  { %1645 = vmatpush.bf16.msra.mxu0 %v2956_v7  ;;  %v3480_v9 = vld [vmem:[#allocation9 + $0x14] sm:$0xf0] }
  0xcc   :  { %1607 = vmatpush.bf16.msrb.mxu1 %v2556_v21  ;;  %v312_v21 = vperm.slane %v3836_v2, 0  ;;  %v3496_v12 = vld [vmem:[#allocation9 + $0x94] sm:$0xf0] }
  0xcd   :  { %1632 = vmatpush.bf16.msra.mxu2 %v2828_v19  ;;  %v3147_v19 = vld [vmem:[#allocation9 + $0xf0] sm:$0xf] }
  0xce   :  { %1619 = vmatpush.bf16.msra.mxu3 %v2700_v18  ;;  %v2889_v18 = vld [vmem:[#allocation6 + $0x518] sm:$0xf0]  ;;  %v3148_v28 = vor.u32 %v3508_v20, %v3147_v19  ;;  %v3085_v19 = vld [vmem:[#allocation9 + $0x78] sm:$0xf0]  ;;  %v3091_v20 = vld [vmem:[#allocation9 + $0x80] sm:$0xf] }
  0xcf   :  { %1646 = vmatpush.bf16.msra.mxu0 %v2940_v41  ;;  %v2892_v7 = vor.u32 %v3442_v17, %v2889_v18  ;;  %v1391_v34 = vpop.f32.mrf.mxu2  ;;  %v3131_v41 = vld [vmem:[#allocation9 + $0xd0] sm:$0xf]  ;;  %v3491_v17 = vld [vmem:[#allocation9 + $0x74] sm:$0xf] }
  0xd0   :  { %1608 = vmatpush.bf16.msrb.mxu1 %v2540_v36  ;;  %v3076_v36 = vor.u32 %v3490_v27, %v3075_v26  ;;  %v3132_v46 = vor.u32 %v3504_v42, %v3131_v41  ;;  %v3088_v27 = vor.u32 %v3491_v17, %v3085_v19  ;;  %v3069_v41 = vld [vmem:[#allocation9 + $0x58] sm:$0xf0]  ;;  %v3479_v17 = vld [vmem:[#allocation9 + $0x14] sm:$0xf] }
  0xd1   :  { %1633 = vmatpush.bf16.msra.mxu2 %v2812_v33  ;;  %v1314_v33 = vadd.f32 %v3828_v16, %v312_v21  ;;  %v3059_v16 = vld [vmem:[#allocation9 + $0x40] sm:$0xf]  ;;  %v3494_v21 = vld [vmem:[#allocation9 + $0x84] sm:$0xf0]  ;;  %v3495_v19 = vld [vmem:[#allocation9 + $0x94] sm:$0xf] }
  0xd2   :  { %1620 = vmatpush.bf16.msra.mxu3 %v2684_v32  ;;  %v3506_v32 = vld [vmem:[#allocation9 + $0xe4] sm:$0xf0]  ;;  %v3060_v53 = vor.u32 %v3486_v44, %v3059_v16  ;;  %v3485_v44 = vld [vmem:[#allocation9 + $0x44] sm:$0xf] }
  0xd3   :  { %1647 = vmatpush.bf16.msra.mxu0 %v2924_v58  ;;  %v3140_v40 = vor.u32 %v3506_v32, %v3139_v29  ;;  %v1327_v43 = vadd.f32 %v3830_v25, %v1314_v33  ;;  %v3051_v25 = vld [vmem:[#allocation9 + $0x30] sm:$0xf]  ;;  %v3489_v29 = vld [vmem:[#allocation9 + $0x64] sm:$0xf]  ;;  %v3077_v32 = vld [vmem:[#allocation9 + $0x68] sm:$0xf0] }
  0xd4   :  { %1609 = vmatpush.bf16.msrb.mxu1 %v2524_v52  ;;  %v3052_v59 = vor.u32 %v3484_v54, %v3051_v25  ;;  %v3203_v25 = vld [vmem:[#allocation9 + $0x160] sm:$0xf]  ;;  %v3522_v54 = vld [vmem:[#allocation9 + $0x164] sm:$0xf0] }
  0xd5   :  { %1634 = vmatpush.bf16.msra.mxu2 %v2796_v49  ;;  %v3502_v49 = vld [vmem:[#allocation9 + $0xc4] sm:$0xf0]  ;;  %v1340_v50 = vadd.f32 %v3832_v31, %v1327_v43  ;;  %v3503_v43 = vld [vmem:[#allocation9 + $0xd4] sm:$0xf] }
  0xd6   :  { %1621 = vmatpush.bf16.msra.mxu3 %v2668_v48  ;;  %v3123_v48 = vld [vmem:[#allocation9 + $0xc0] sm:$0xf] }
  0xd7   :  { %1648 = vmatpush.bf16.msra.mxu0 %v2908_v13  ;;  %v1365_v47 = vpop.f32.mrf.mxu0  ;;  %v1393_v52 = vpop.f32.mrf.mxu2  ;;  %v1353_v58 = vadd.f32 %v3834_v37, %v1340_v50  ;;  %v3211_v50 = vld [vmem:[#allocation9 + $0x170] sm:$0xf] }
  0xd8   :  { %1610 = vmatpush.bf16.msrb.mxu1 %v2508_v8  ;;  %v3035_v8 = vld [vmem:[#allocation9 + $0x10] sm:$0xf] }
  0xd9   :  { %1635 = vmatpush.bf16.msra.mxu2 %v2780_v5  ;;  %v1366_v60 = vadd.f32 %v1365_v47, %v1353_v58  ;;  %v3044_v5 = vor.u32 %v3482_v62, %v3043_v61  ;;  %v3036_v13 = vor.u32 %v3480_v9, %v3035_v8  ;;  %v3483_v58 = vld [vmem:[#allocation9 + $0x34] sm:$0xf]  ;;  %v3204_v61 = vor.u32 %v3522_v54, %v3203_v25  ;;  %v3109_v9 = vld [vmem:[#allocation9 + $0xa8] sm:$0xf0]  ;;  %v3510_v25 = vld [vmem:[#allocation9 + $0x104] sm:$0xf0] }
  0xda   :  { %1622 = vmatpush.bf16.msra.mxu3 %v2652_v4  ;;  %v3499_v62 = vld [vmem:[#allocation9 + $0xb4] sm:$0xf] }
  0xdb   :  { %1611 = vmatmul.bf16.vlgmr.msrb.gmra.mxu1 %v3788_v51  ;;  %1649 = vmatpush.bf16.msra.mxu0 %v2892_v7  ;;  %v3068_v51 = vor.u32 %v3488_v39, %v3067_v38  ;;  %v3080_v39 = vor.u32 %v3489_v29, %v3077_v32  ;;  %v3493_v29 = vld [vmem:[#allocation9 + $0x84] sm:$0xf]  ;;  %v3516_v32 = vld [vmem:[#allocation9 + $0x134] sm:$0xf0] }
  0xdc   :  { %1662 = vmatpush.bf16.msra.mxu1 %v3020_v14 }
  0xdd   :  { %1636 = vmatpush.bf16.msra.mxu2 %v2764_v23  ;;  %v3149_v23 = vld [vmem:[#allocation9 + $0xf8] sm:$0xf0] }
  0xde   :  { %1623 = vmatpush.bf16.msra.mxu3 %v2636_v22  ;;  %1650 = vmatmul.bf16.vlgmr.msra.gmra.mxu0 %v3806_v35  ;;  %v3500_v35 = vld [vmem:[#allocation9 + $0xb4] sm:$0xf0]  ;;  %v3507_v22 = vld [vmem:[#allocation9 + $0xf4] sm:$0xf] }
  0xdf   :  { %v3116_v63 = vor.u32 %v3500_v35, %v3115_v56  ;;  %v1367_v0 = vpop.f32.mrf.mxu0  ;;  %v3152_v33 = vor.u32 %v3507_v22, %v3149_v23  ;;  %v313_v56 = vperm.slane %v3836_v2, 1  ;;  %v3518_v22 = vld [vmem:[#allocation9 + $0x144] sm:$0xf0] }
  0xe0   :  { %2079 = vmatpush.bf16.msrb.mxu1 %v3148_v28  ;;  %1637 = vmatmul.bf16.vlgmr.msra.gmra.mxu2 %v3804_v30  ;;  %v3124_v30 = vor.u32 %v3502_v49, %v3123_v48  ;;  %v3847_v31 = vpop.f32.mrf.mxu3  ;;  %v3092_v28 = vor.u32 %v3494_v21, %v3091_v20  ;;  %v3501_v48 = vld [vmem:[#allocation9 + $0xc4] sm:$0xf]  ;;  %v3125_v49 = vld [vmem:[#allocation9 + $0xc8] sm:$0xf0]  ;;  %v3101_v20 = vld [vmem:[#allocation9 + $0x98] sm:$0xf0] }
  0xe1   :  { %1624 = vmatmul.bf16.vlgmr.msra.gmra.mxu3 %v3792_v57  ;;  %v1378_v57 = vpop.f32.mrf.mxu1  ;;  %v1405_v1 = vadd.f32 %v3847_v31, %v313_v56  ;;  %v3187_v21 = vld [vmem:[#allocation9 + $0x140] sm:$0xf]  ;;  %v3523_v56 = vld [vmem:[#allocation9 + $0x174] sm:$0xf] }
  0xe2   :  { %2066 = vmatpush.bf16.msrb.mxu3 %v3084_v24  ;;  %v1379_v37 = vadd.f32 %v1378_v57, %v1366_v60  ;;  %v3028_v24 = vor.u32 %v3478_v55, %v3027_v15  ;;  %v3524_v57 = vld [vmem:[#allocation9 + $0x174] sm:$0xf0]  ;;  %v3128_v60 = vor.u32 %v3501_v48, %v3125_v49 }
  0xe3   :  { %v3851_v6 = vpop.f32.mrf.mxu2 }
  0xe4   :  { %2080 = vmatpush.bf16.msrb.mxu1 %v3140_v40  ;;  %v1392_v14 = vadd.f32 %v1391_v34, %v1379_v37  ;;  %v3505_v34 = vld [vmem:[#allocation9 + $0xe4] sm:$0xf]  ;;  %v3487_v40 = vld [vmem:[#allocation9 + $0x54] sm:$0xf]  ;;  %v1418_v55 = vadd.f32 %v3851_v6, %v1405_v1  ;;  %v3179_v6 = vld [vmem:[#allocation9 + $0x130] sm:$0xf] }
  0xe5   :  { %v3072_v16 = vor.u32 %v3487_v40, %v3069_v41  ;;  %v3497_v37 = vld [vmem:[#allocation9 + $0xa4] sm:$0xf]  ;;  %v3514_v40 = vld [vmem:[#allocation9 + $0x124] sm:$0xf0] }
  0xe6   :  { %2067 = vmatpush.bf16.msrb.mxu3 %v3076_v36  ;;  %v1668_v26 = vmax.f32 %v1392_v14, 0.0  ;;  %v3141_v36 = vld [vmem:[#allocation9 + $0xe8] sm:$0xf0] }
  0xe7   :  { %v3144_v42 = vor.u32 %v3505_v34, %v3141_v36  ;;  %v3093_v34 = vld [vmem:[#allocation9 + $0x88] sm:$0xf0]  ;;  %v3180_v36 = vor.u32 %v3516_v32, %v3179_v6 }
  0xe8   :  { %2081 = vmatpush.bf16.msrb.mxu1 %v3132_v46  ;;  %v1406_v18 = vpop.f32.mrf.mxu3  ;;  %v3853_v38 = vpack.c.bf16 %v1668_v26, %v1668_v26  ;;  %v3061_v46 = vld [vmem:[#allocation9 + $0x48] sm:$0xf0]  ;;  %v3477_v26 = vld [vmem:[#allocation9 + $0x4] sm:$0xf] }
  0xe9   :  { %v1380_v4 = vpop.f32.mrf.mxu1  ;;  %v3112_v18 = vor.u32 %v3497_v37, %v3109_v9  ;;  %v3538_v9 = vld [vmem:[#allocation9 + $0x1e4] sm:$0xf0] }
  0xea   :  { %2068 = vmatpush.bf16.msrb.mxu3 %v3068_v51  ;;  %v3133_v51 = vld [vmem:[#allocation9 + $0xd8] sm:$0xf0]  ;;  %v3045_v4 = vld [vmem:[#allocation9 + $0x28] sm:$0xf0] }
  0xeb   :  { %3024 = vmatmul.msk.bf16.vlgmr.msra.gmra.mxu1 %vm1300_vm0, %v3800_v45  ;;  %v3100_v45 = vor.u32 %v3496_v12, %v3099_v11  ;;  %v1419_v7 = vpop.f32.mrf.mxu2  ;;  %v3136_v47 = vor.u32 %v3503_v43, %v3133_v51  ;;  %v3520_v11 = vld [vmem:[#allocation9 + $0x154] sm:$0xf0]  ;;  %v3048_v15 = vor.u32 %v3481_v3, %v3045_v4  ;;  %v3519_v4 = vld [vmem:[#allocation9 + $0x154] sm:$0xf] }
  0xec   :  { %2082 = vmatpush.bf16.msrb.mxu1 %v3124_v30  ;;  %v3064_v30 = vor.u32 %v3485_v44, %v3061_v46  ;;  %v3163_v46 = vld [vmem:[#allocation9 + $0x110] sm:$0xf] }
  0xee   :  { %2069 = vmatpush.bf16.msrb.mxu3 %v3060_v53  ;;  %v3212_v53 = vor.u32 %v3524_v57, %v3211_v50 }
  0xf0   :  { %2083 = vmatpush.bf16.msrb.mxu1 %v3116_v63  ;;  %2092 = vmatpush.bf16.msrb.mxu2 %v3212_v53  ;;  %v3117_v63 = vld [vmem:[#allocation9 + $0xb8] sm:$0xf0]  ;;  %v3155_v53 = vld [vmem:[#allocation9 + $0x100] sm:$0xf] }
  0xf2   :  { %2070 = vmatpush.bf16.msrb.mxu3 %v3052_v59  ;;  %v3053_v59 = vld [vmem:[#allocation9 + $0x38] sm:$0xf0] }
  0xf3   :  { %v3056_v0 = vor.u32 %v3483_v58, %v3053_v59  ;;  %v3521_v58 = vld [vmem:[#allocation9 + $0x164] sm:$0xf] }
  0xf4   :  { %2084 = vmatpush.bf16.msrb.mxu1 %v3108_v10  ;;  %2093 = vmatpush.bf16.msrb.mxu2 %v3204_v61  ;;  %v3195_v10 = vld [vmem:[#allocation9 + $0x150] sm:$0xf] }
  0xf5   :  { %v3275_v61 = vld [vmem:[#allocation9 + $0x1f0] sm:$0xf] }
  0xf6   :  { %2071 = vmatpush.bf16.msrb.mxu3 %v3044_v5  ;;  %v3120_v5 = vor.u32 %v3499_v62, %v3117_v63  ;;  %v3540_v62 = vld [vmem:[#allocation9 + $0x1f4] sm:$0xf0] }
  0xf7   :  { %v1430_v52 = vpop.f32.mrf.mxu0  ;;  %v3276_v63 = vor.u32 %v3540_v62, %v3275_v61  ;;  %v3537_v62 = vld [vmem:[#allocation9 + $0x1e4] sm:$0xf] }
  0xf8   :  { %2085 = vmatpush.bf16.msrb.mxu1 %v3100_v45  ;;  %v1443_v35 = vpop.f32.mrf.mxu1  ;;  %v3037_v45 = vld [vmem:[#allocation9 + $0x18] sm:$0xf0]  ;;  %v1431_v23 = vadd.f32 %v1430_v52, %v1418_v55 }
  0xf9   :  { %v3040_v7 = vor.u32 %v3479_v17, %v3037_v45  ;;  %2105 = vmatpush.bf16.msrb.mxu0 %v3276_v63  ;;  %v3259_v45 = vld [vmem:[#allocation9 + $0x1d0] sm:$0xf]  ;;  %v3269_v63 = vld [vmem:[#allocation9 + $0x1e8] sm:$0xf0] }
  0xfa   :  { %2072 = vmatpush.bf16.msrb.mxu3 %v3036_v13  ;;  %v3196_v13 = vor.u32 %v3520_v11, %v3195_v10  ;;  %v1444_v41 = vadd.f32 %v1443_v35, %v1431_v23  ;;  %v3213_v35 = vld [vmem:[#allocation9 + $0x178] sm:$0xf0]  ;;  %v3534_v23 = vld [vmem:[#allocation9 + $0x1c4] sm:$0xf0] }
  0xfb   :  { %v3216_v59 = vor.u32 %v3523_v56, %v3213_v35  ;;  %v3539_v35 = vld [vmem:[#allocation9 + $0x1f4] sm:$0xf] }
  0xfc   :  { %2086 = vmatpush.bf16.msrb.mxu1 %v3092_v28  ;;  %2094 = vmatpush.bf16.msrb.mxu2 %v3196_v13  ;;  %v3104_v28 = vor.u32 %v3495_v19, %v3101_v20  ;;  %v3517_v13 = vld [vmem:[#allocation9 + $0x144] sm:$0xf]  ;;  %v3515_v19 = vld [vmem:[#allocation9 + $0x134] sm:$0xf]  ;;  %v3181_v20 = vld [vmem:[#allocation9 + $0x138] sm:$0xf0] }
  0xfe   :  { %2073 = vmatpush.bf16.msrb.mxu3 %v3028_v24  ;;  %v3188_v24 = vor.u32 %v3518_v22, %v3187_v21  ;;  %v3184_v21 = vor.u32 %v3515_v19, %v3181_v20  ;;  %v3251_v22 = vld [vmem:[#allocation9 + $0x1c0] sm:$0xf]  ;;  %v3529_v20 = vld [vmem:[#allocation9 + $0x1a4] sm:$0xf] }
  0xff   :  { %v1432_v12 = vpop.f32.mrf.mxu0 }
 0x100   :  { %2131 = vmatpush.bf16.msra.mxu1 %v3152_v33  ;;  %v1456_v8 = vpop.f32.mrf.mxu3  ;;  %v1445_v31 = vpop.f32.mrf.mxu1  ;;  %2095 = vmatpush.bf16.msrb.mxu2 %v3188_v24  ;;  %v3513_v24 = vld [vmem:[#allocation9 + $0x124] sm:$0xf] }
 0x101   :  { %2074 = vmatmul.bf16.vlgmr.msrb.gmra.mxu3 %v3853_v38  ;;  %v1457_v51 = vadd.f32 %v1456_v8, %v1444_v41  ;;  %v3267_v8 = vld [vmem:[#allocation9 + $0x1e0] sm:$0xf]  ;;  %v3536_v31 = vld [vmem:[#allocation9 + $0x1d4] sm:$0xf0] }
 0x102   :  { %2118 = vmatpush.bf16.msra.mxu3 %v3088_v27  ;;  %v3029_v27 = vld [vmem:[#allocation9 + $0x8] sm:$0xf0]  ;;  %v3268_v10 = vor.u32 %v3538_v9, %v3267_v8  ;;  %v3235_v41 = vld [vmem:[#allocation9 + $0x1a0] sm:$0xf]  ;;  %v3261_v8 = vld [vmem:[#allocation9 + $0x1d8] sm:$0xf0] }
 0x103   :  { %v1469_v14 = vpop.f32.mrf.mxu2 }
 0x104   :  { %2132 = vmatpush.bf16.msra.mxu1 %v3144_v42  ;;  %v3032_v42 = vor.u32 %v3477_v26, %v3029_v27  ;;  %2096 = vmatpush.bf16.msrb.mxu2 %v3180_v36  ;;  %v1470_v48 = vadd.f32 %v1469_v14, %v1457_v51  ;;  %v3189_v14 = vld [vmem:[#allocation9 + $0x148] sm:$0xf0]  ;;  %v3243_v27 = vld [vmem:[#allocation9 + $0x1b0] sm:$0xf]  ;;  %v3165_v36 = vld [vmem:[#allocation9 + $0x118] sm:$0xf0] }
 0x105   :  { %2106 = vmatpush.bf16.msrb.mxu0 %v3268_v10  ;;  %v3192_v17 = vor.u32 %v3517_v13, %v3189_v14  ;;  %v3173_v26 = vld [vmem:[#allocation9 + $0x128] sm:$0xf0]  ;;  %v3533_v13 = vld [vmem:[#allocation9 + $0x1c4] sm:$0xf] }
 0x106   :  { %2119 = vmatpush.bf16.msra.mxu3 %v3080_v39  ;;  %v3171_v39 = vld [vmem:[#allocation9 + $0x120] sm:$0xf]  ;;  %v3176_v32 = vor.u32 %v3513_v24, %v3173_v26  ;;  %v3253_v14 = vld [vmem:[#allocation9 + $0x1c8] sm:$0xf0]  ;;  %v3229_v24 = vld [vmem:[#allocation9 + $0x198] sm:$0xf0] }
 0x107   :  { %v3172_v44 = vor.u32 %v3514_v40, %v3171_v39  ;;  %v314_v39 = vperm.slane %v3836_v2, 2 }
 0x108   :  { %2133 = vmatpush.bf16.msra.mxu1 %v3136_v47  ;;  %v1458_v33 = vpop.f32.mrf.mxu3  ;;  %v3512_v47 = vld [vmem:[#allocation9 + $0x114] sm:$0xf0] }
 0x109   :  { %2097 = vmatpush.bf16.msrb.mxu2 %v3172_v44  ;;  %v3164_v49 = vor.u32 %v3512_v47, %v3163_v46  ;;  %v3509_v46 = vld [vmem:[#allocation9 + $0x104] sm:$0xf]  ;;  %v3157_v47 = vld [vmem:[#allocation9 + $0x108] sm:$0xf0] }
 0x10a   :  { %2120 = vmatpush.bf16.msra.mxu3 %v3072_v16  ;;  %v3096_v16 = vor.u32 %v3493_v29, %v3093_v34  ;;  %v3511_v34 = vld [vmem:[#allocation9 + $0x114] sm:$0xf] }
 0x10b   :  { %v1471_v43 = vpop.f32.mrf.mxu2 }
 0x10c   :  { %2134 = vmatpush.bf16.msra.mxu1 %v3128_v60  ;;  %v3205_v60 = vld [vmem:[#allocation9 + $0x168] sm:$0xf0]  ;;  %v3168_v43 = vor.u32 %v3511_v34, %v3165_v36 }
 0x10d   :  { %2098 = vmatpush.bf16.msrb.mxu2 %v3164_v49  ;;  %v3160_v49 = vor.u32 %v3509_v46, %v3157_v47 }
 0x10e   :  { %2121 = vmatpush.bf16.msra.mxu3 %v3064_v30  ;;  %v3156_v30 = vor.u32 %v3510_v25, %v3155_v53 }
 0x110   :  { %2135 = vmatpush.bf16.msra.mxu1 %v3120_v5  ;;  %v1482_v50 = vpop.f32.mrf.mxu3  ;;  %v3197_v5 = vld [vmem:[#allocation9 + $0x158] sm:$0xf0] }
 0x111   :  { %v1483_v57 = vadd.f32 %v1482_v50, %v1470_v48  ;;  %2099 = vmatpush.bf16.msrb.mxu2 %v3156_v30  ;;  %v3200_v37 = vor.u32 %v3519_v4, %v3197_v5  ;;  %v3227_v50 = vld [vmem:[#allocation9 + $0x190] sm:$0xf]  ;;  %v3526_v30 = vld [vmem:[#allocation9 + $0x184] sm:$0xf0] }
 0x112   :  { %2122 = vmatpush.bf16.msra.mxu3 %v3056_v0 }
 0x113   :  { %v1669_v52 = vmax.f32 %v1483_v57, 0.0  ;;  %v3528_v57 = vld [vmem:[#allocation9 + $0x194] sm:$0xf0] }
 0x114   :  { %2136 = vmatpush.bf16.msra.mxu1 %v3112_v18  ;;  %v3260_v18 = vor.u32 %v3536_v31, %v3259_v45  ;;  %v3531_v31 = vld [vmem:[#allocation9 + $0x1b4] sm:$0xf] }
 0x115   :  { %v1673_v54 = vpack.c.bf16 %v1669_v52, %v1669_v52  ;;  %2144 = vmatpush.bf16.msra.mxu2 %v3216_v59  ;;  %v3228_v52 = vor.u32 %v3528_v57, %v3227_v50 }
 0x116   :  { %2123 = vmatpush.bf16.msra.mxu3 %v3048_v15  ;;  %2107 = vmatpush.bf16.msrb.mxu0 %v3260_v18  ;;  %v3245_v18 = vld [vmem:[#allocation9 + $0x1b8] sm:$0xf0] }
 0x117   :  { %2087 = vmatmul.bf16.vlgmr.msrb.gmra.mxu1 %v1673_v54  ;;  %v3860_v1 = vpop.f32.mrf.mxu0  ;;  %v3248_v19 = vor.u32 %v3531_v31, %v3245_v18  ;;  %v2173_v31 = vld [vmem:[#allocation11] sm:$0xff] }
 0x118   :  { %2137 = vmatpush.bf16.msra.mxu1 %v3104_v28  ;;  %v1484_v0 = vpop.f32.mrf.mxu3  ;;  %v1495_v3 = vpop.f32.mrf.mxu1  ;;  %v3532_v28 = vld [vmem:[#allocation9 + $0x1b4] sm:$0xf0] }
 0x119   :  { %v3244_v33 = vor.u32 %v3532_v28, %v3243_v27  ;;  %v3525_v27 = vld [vmem:[#allocation9 + $0x184] sm:$0xf]  ;;  %v3221_v28 = vld [vmem:[#allocation9 + $0x188] sm:$0xf0] }
 0x11a   :  { %2124 = vmatpush.bf16.msra.mxu3 %v3040_v7  ;;  %v3252_v7 = vor.u32 %v3534_v23, %v3251_v22  ;;  %v3527_v23 = vld [vmem:[#allocation9 + $0x194] sm:$0xf] }
 0x11b   :  { %v3232_v26 = vor.u32 %v3527_v23, %v3229_v24 }
 0x11c   :  { %2138 = vmatpush.bf16.msra.mxu1 %v3096_v16  ;;  %2108 = vmatpush.bf16.msrb.mxu0 %v3252_v7  ;;  %v1496_v16 = vadd.f32 %v1495_v3, %v314_v39  ;;  %v3272_v3 = vor.u32 %v3537_v62, %v3269_v63  ;;  %v315_v7 = vperm.slane %v3836_v2, 3 }
 0x11e   :  { %2125 = vmatpush.bf16.msra.mxu3 %v3032_v42  ;;  %v3530_v42 = vld [vmem:[#allocation9 + $0x1a4] sm:$0xf0] }
 0x11f   :  { %v1523_v12 = vpop.f32.mrf.mxu0  ;;  %v3236_v51 = vor.u32 %v3530_v42, %v3235_v41 }
 0x120   :  { %v1497_v55 = vpop.f32.mrf.mxu1  ;;  %2109 = vmatpush.bf16.msrb.mxu0 %v3244_v33 }
 0x121   :  { %2126 = vmatmul.bf16.vlgmr.msra.gmra.mxu3 %v3853_v38  ;;  %v3208_v38 = vor.u32 %v3521_v58, %v3205_v60  ;;  %v3277_v58 = vld [vmem:[#allocation9 + $0x1f8] sm:$0xf0]  ;;  %v3256_v55 = vor.u32 %v3533_v13, %v3253_v14 }
 0x122   :  { %v3280_v59 = vor.u32 %v3539_v35, %v3277_v58 }
 0x123   :  { %2145 = vmatpush.bf16.msra.mxu2 %v3208_v38  ;;  %v1534_v15 = vpop.f32.mrf.mxu2 }
 0x124   :  { %v1508_v11 = vpop.f32.mrf.mxu3  ;;  %2110 = vmatpush.bf16.msrb.mxu0 %v3236_v51 }
 0x125   :  { %v1509_v48 = vadd.f32 %v1508_v11, %v1496_v16 }
 0x127   :  { %2146 = vmatpush.bf16.msra.mxu2 %v3200_v37  ;;  %2139 = vmatmul.bf16.vlgmr.msra.gmra.mxu1 %v1673_v54  ;;  %v1573_v6 = vpop.f32.mrf.mxu0  ;;  %v1522_v25 = vadd.f32 %v3860_v1, %v1509_v48  ;;  %v3219_v54 = vld [vmem:[#allocation9 + $0x180] sm:$0xf]  ;;  %v3535_v1 = vld [vmem:[#allocation9 + $0x1d4] sm:$0xf] }
 0x128   :  { %2111 = vmatpush.bf16.msrb.mxu0 %v3228_v52  ;;  %v3220_v56 = vor.u32 %v3526_v30, %v3219_v54  ;;  %v3264_v10 = vor.u32 %v3535_v1, %v3261_v8 }
 0x129   :  { %v1535_v60 = vadd.f32 %v1534_v15, %v1522_v25 }
 0x12b   :  { %2147 = vmatpush.bf16.msra.mxu2 %v3192_v17  ;;  %v1536_v40 = vpop.f32.mrf.mxu2 }
 0x12c   :  { %v1510_v29 = vpop.f32.mrf.mxu3  ;;  %2112 = vmatpush.bf16.msrb.mxu0 %v3220_v56 }
 0x12f   :  { %2148 = vmatpush.bf16.msra.mxu2 %v3184_v21  ;;  %v1575_v44 = vpop.f32.mrf.mxu0  ;;  %v3237_v21 = vld [vmem:[#allocation9 + $0x1a8] sm:$0xf0] }
 0x130   :  { %2157 = vmatpush.bf16.msra.mxu0 %v3280_v59  ;;  %v3240_v22 = vor.u32 %v3529_v20, %v3237_v21 }
 0x133   :  { %2149 = vmatpush.bf16.msra.mxu2 %v3176_v32  ;;  %v3224_v32 = vor.u32 %v3525_v27, %v3221_v28 }
 0x134   :  { %2158 = vmatpush.bf16.msra.mxu0 %v3272_v3 }
 0x137   :  { %2150 = vmatpush.bf16.msra.mxu2 %v3168_v43 }
 0x138   :  { %v1547_v53 = vpop.f32.mrf.mxu1  ;;  %2159 = vmatpush.bf16.msra.mxu0 %v3264_v10 }
 0x139   :  { %v1548_v0 = vadd.f32 %v1547_v53, %v1535_v60  ;;  %v1740_v53 = vld [vmem:[%s3878_s4] sm:$0x3]  ;;  %s3731_s4 = smov [#allocation12]  }
 0x13a   :  { %v1742_v25 = vperm.slane %v1740_v53, 0  ;;  %v1743_v60 = vperm.slane %v1740_v53, 1  ;;  %s2208_s27 = sshll.u32 %s3731_s4, 4  ;;  %s2209_s27 = int_to_ptr.vmem [resolvable:$true] %s2208_s27 }
 0x13b   :  { %2151 = vmatpush.bf16.msra.mxu2 %v3160_v49  ;;  %v1599_v61 = vpop.f32.mrf.mxu0 }
 0x13c   :  { %2160 = vmatpush.bf16.msra.mxu0 %v3256_v55 }
 0x140   :  { %v1549_v38 = vpop.f32.mrf.mxu1  ;;  %2161 = vmatpush.bf16.msra.mxu0 %v3248_v19 }
 0x143   :  { %v1586_v37 = vpop.f32.mrf.mxu2  ;;  %v1601_v12 = vpop.f32.mrf.mxu0 }
 0x144   :  { %v1560_v4 = vpop.f32.mrf.mxu3  ;;  %2162 = vmatpush.bf16.msra.mxu0 %v3240_v22  ;;  %v1587_v29 = vadd.f32 %v1586_v37, %v315_v7 }
 0x145   :  { %v1561_v5 = vadd.f32 %v1560_v4, %v1548_v0 }
 0x146   :  { %v1600_v33 = vadd.f32 %v1599_v61, %v1587_v29 }
 0x147   :  { %v1574_v9 = vadd.f32 %v1573_v6, %v1561_v5 }
 0x148   :  { %2163 = vmatpush.bf16.msra.mxu0 %v3232_v26 }
 0x149   :  { %v1670_v11 = vmax.f32 %v1574_v9, 0.0 }
 0x14b   :  { %v1674_v15 = vpack.c.bf16 %v1670_v11, %v1670_v11  ;;  %v1588_v45 = vpop.f32.mrf.mxu2 }
 0x14c   :  { %v1562_v17 = vpop.f32.mrf.mxu3  ;;  %2164 = vmatpush.bf16.msra.mxu0 %v3224_v32 }
 0x14d   :  { %2100 = vmatmul.bf16.vlgmr.msrb.gmra.mxu2 %v1674_v15 }
 0x158   :  { %v1612_v6 = vpop.f32.mrf.mxu1 }
 0x159   :  { %v1613_v36 = vadd.f32 %v1612_v6, %v1600_v33 }
 0x15b   :  { %v1651_v34 = vpop.f32.mrf.mxu0 }
 0x15d   :  { %2152 = vmatmul.bf16.vlgmr.msra.gmra.mxu2 %v1674_v15 }
 0x160   :  { %v1614_v39 = vpop.f32.mrf.mxu1 }
 0x163   :  { %v1638_v42 = vpop.f32.mrf.mxu2  ;;  %v1653_v51 = vpop.f32.mrf.mxu0 }
 0x164   :  { %v1625_v40 = vpop.f32.mrf.mxu3 }
 0x165   :  { %v1626_v41 = vadd.f32 %v1625_v40, %v1613_v36 }
 0x167   :  { %v1639_v43 = vadd.f32 %v1638_v42, %v1626_v41 }
 0x168   :  { %v1664_v16 = vpop.f32.mrf.mxu1 }
 0x169   :  { %v1652_v2 = vadd.f32 %v1651_v34, %v1639_v43 }
 0x16b   :  { %v1665_v44 = vadd.f32 %v1664_v16, %v1652_v2  ;;  %v1640_v47 = vpop.f32.mrf.mxu2 }
 0x16c   :  { %v1627_v46 = vpop.f32.mrf.mxu3 }
 0x16d   :  { %v1671_v48 = vmax.f32 %v1665_v44, 0.0 }
 0x16f   :  { %v1675_v49 = vpack.c.bf16 %v1671_v48, %v1671_v48 }
 0x170   :  { %v1666_v50 = vpop.f32.mrf.mxu1 }
 0x171   :  { %2113 = vmatmul.bf16.vlgmr.msrb.gmra.mxu0 %v1675_v49 }
 0x181   :  { %2165 = vmatmul.bf16.vlgmr.msra.gmra.mxu0 %v1675_v49 }
 0x184   :  { %v2075_v57 = vpop.f32.mrf.mxu3 }
 0x185   :  { %v2076_v54 = vadd.f32 %v2075_v57, %v1742_v25 }
 0x18c   :  { %v2077_v52 = vpop.f32.mrf.mxu3 }
 0x194   :  { %v2088_v30 = vpop.f32.mrf.mxu1 }
 0x195   :  { %v2089_v35 = vadd.f32 %v2088_v30, %v2076_v54 }
 0x19c   :  { %v2090_v58 = vpop.f32.mrf.mxu1 }
 0x1a4   :  { %v2127_v56 = vpop.f32.mrf.mxu3  ;;  %v2140_v62 = vpop.f32.mrf.mxu1 }
 0x1a5   :  { %v2128_v61 = vadd.f32 %v2127_v56, %v1743_v60 }
 0x1a7   :  { %v2141_v63 = vadd.f32 %v2140_v62, %v2128_v61 }
 0x1ac   :  { %v2129_v59 = vpop.f32.mrf.mxu3  ;;  %v2142_v0 = vpop.f32.mrf.mxu1 }
 0x1d0   :  { %v2101_v38 = vpop.f32.mrf.mxu2 }
 0x1d1   :  { %v2102_v8 = vadd.f32 %v2101_v38, %v2089_v35 }
 0x1d8   :  { %v2103_v3 = vpop.f32.mrf.mxu2 }
 0x1e0   :  { %v2153_v4 = vpop.f32.mrf.mxu2 }
 0x1e1   :  { %v2154_v9 = vadd.f32 %v2153_v4, %v2141_v63 }
 0x1e8   :  { %v2155_v5 = vpop.f32.mrf.mxu2 }
 0x1ee   :  { %v2114_v37 = vpop.f32.mrf.mxu0 }
 0x1ef   :  { %v2115_v10 = vadd.f32 %v2114_v37, %v2102_v8 }
 0x1f1   :  { %v2178_v13 = vmul.f32 %v2115_v10, %v2115_v10 }
 0x1f6   :  { %v2116_v1 = vpop.f32.mrf.mxu0 }
 0x1fe   :  { %v2166_v11 = vpop.f32.mrf.mxu0 }
 0x1ff   :  { %v2167_v12 = vadd.f32 %v2166_v11, %v2154_v9 }
 0x201   :  { %v2170_v14 = vmul.f32 0.5, %v2167_v12  ;;  %v2177_v15 = vadd.f32 1.0, %v2167_v12 }
 0x203   :  { %v2171_v55 = vmul.f32 1.442695, %v2170_v14  ;;  %v2179_v17 = vsub.f32 %v2177_v15, %v2178_v13 }
 0x205   :  { %3554 = vpow2.f32 %v2171_v55 }
 0x206   :  { %v2168_v45 = vpop.f32.mrf.mxu0 }
 0x20b   :  { %v3555_v18 = vpop.eup %3554 }
 0x20c   :  { %v2180_v19 = vmul.f32 %v3555_v18, %v3555_v18  ;;  %v2174_v20 = vmul.f32 %v3555_v18, %v2173_v31 }
 0x20e   :  { %v2181_v21 = vsub.f32 %v2179_v17, %v2180_v19  ;;  %v2175_v22 = vadd.f32 %v2174_v20, %v2115_v10 }
 0x210   :  { %2191 = vadd.xlane.f32.xlu0 %v2181_v21  ;;  %2176 = vst [vmem:[#allocation12] sm:$0xff] %v2175_v22 }
 0x211   :  { %2213 = dma.vmem_to_hbm [thread:$0]  %s2209_s27, 128, %s2211_s30, [#allocation4]  }
 0x283   :  { %v2192_v23 = vpop.xlane.xlu0 %2191 }
 0x284   :  { %v2193_v24 = vrot.slane %v2192_v23, 4 }
 0x286   :  { %v2194_v7 = vadd.f32 %v2193_v24, %v2192_v23 }
 0x288   :  { %v2195_v26 = vrot.slane %v2194_v7, 2 }
 0x28a   :  { %v2196_v27 = vadd.f32 %v2195_v26, %v2194_v7 }
 0x28c   :  { %v2197_v28 = vrot.slane %v2196_v27, 1 }
 0x28e   :  { %v2198_v29 = vadd.f32 %v2197_v28, %v2196_v27 }
 0x290   :  { %3541 = vpush %v2198_v29 }
 0x2c1   :  { %s3542_s11 = spop %3541 }
 0x2c2   :  { %s2200_s12 = smul.f32 -0.5, %s3542_s11 }
 0x2c4   :  { %2202 = sst [smem:[#allocation13]] %s2200_s12 }
 0x2c5   :  { %2222 = dma.smem_to_hbm %s3732_s6, 16, %s2220_s10, [#allocation5]  }
 0x2c6   :  { %3718 = dma.done.wait [#allocation4], 128  }
 0x2c7   :  { %3719 = vsyncadd [#allocation4], 4294967168 }
 0x2c8   :  { %3720 = dma.done.wait [#allocation5], 16  }
 0x2c9   :  { %3721 = vsyncadd [#allocation5], 4294967280 }
 0x2ca   :  { %2231 = sfence }
 0x2cb   :  { %2232 = vsyncpa [#allocation3], 1 }
 0x2cc   :  { %2233 = vsyncpa [#allocation7], 1 }
 0x2cd   :  { %2234 = vsyncpa [#allocation10], 1 }
 0x2ce   :  { %2235 = vsyncpa [#allocation4], 1 }
 0x2cf   :  { %2236 = vsyncpa [#allocation5], 1 }

</bundles_post_ra>
